<compile_context>
chip_gen: v7x
topology: tpu7x:2x2x1
jax: 0.10.0
libtpu: 0.0.40
codegen_flags: <defaults>
</compile_context>

<pallas_src>
import jax
import jax.numpy as jnp
import numpy as np
from jax.experimental import pallas as pl
from jax.experimental.pallas import tpu as pltpu

HIDDEN = 512  # fixed by the module definition


def foldingnet_kernel(seedp_ref, feat1_ref, feat2_ref,
                      w2_ref, b2_ref, w3_ref, b3_ref,
                      w4d_ref, w5_ref, b5_ref, w6_ref, b6_ref,
                      out_ref):
    # seedp_ref: (TN, 512) f32   seed @ w1[:2] for this tile of sample rows
    # feat1_ref: (B, 512)  f32   feature @ w1[2:] + b1 (whole array, resident)
    # feat2_ref: (B, 512)  f32   feature @ w4[3:] + b4 (whole array, resident)
    # w2/w5: (512,512) bf16 ; w3/w6: (512,3) bf16 ; w4d: (3,512) bf16
    # biases f32 ; out_ref: (1, TN, 3) f32
    b = pl.program_id(1)                          # batch index (inner grid axis)
    f1 = feat1_ref[pl.ds(b, 1), :]                # (1, 512)
    f2 = feat2_ref[pl.ds(b, 1), :]                # (1, 512)

    # ---- folding1
    h = jnp.maximum(seedp_ref[...] + f1, 0.0)                                 # (TN, 512)
    h = jnp.dot(h.astype(jnp.bfloat16), w2_ref[...],
                preferred_element_type=jnp.float32) + b2_ref[...]
    h = jnp.maximum(h, 0.0)
    fd1 = jnp.dot(h.astype(jnp.bfloat16), w3_ref[...],
                  preferred_element_type=jnp.float32) + b3_ref[...]           # (TN, 3)

    # ---- folding2
    h2 = jnp.dot(fd1.astype(jnp.bfloat16), w4d_ref[...],
                 preferred_element_type=jnp.float32) + f2
    h2 = jnp.maximum(h2, 0.0)
    h2 = jnp.dot(h2.astype(jnp.bfloat16), w5_ref[...],
                 preferred_element_type=jnp.float32) + b5_ref[...]
    h2 = jnp.maximum(h2, 0.0)
    fd2 = jnp.dot(h2.astype(jnp.bfloat16), w6_ref[...],
                  preferred_element_type=jnp.float32) + b6_ref[...]           # (TN, 3)

    out_ref[...] = fd2[None].astype(out_ref.dtype)


def _round_up(x, m):
    return (x + m - 1) // m * m


def folding_net_forward(feature_global, seed, params, row_tile=1024):
    """feature_global: (B, C) f32; seed: (N, 2) f32; params: dict of folded weights.

    Returns (B, N, 3) f32 (== PyTorch fd2.transpose(2, 1))."""
    B, _ = feature_global.shape
    N = seed.shape[0]

    # ---- hoisted skinny / batch-invariant matmuls: plain XLA, run once.
    feat1 = feature_global @ params["w1f"] + params["b1"]     # (B, 512)
    feat2 = feature_global @ params["w4f"] + params["b4"]     # (B, 512)
    seed_proj = seed @ params["w1s"]                          # (N, 512), batch-invariant

    # ---- N tiling: multiples of 8 sublanes, capped at row_tile.
    tn = min(_round_up(row_tile, 8), _round_up(N, 8))
    n_pad = _round_up(N, tn)
    if n_pad != N:
        seed_proj = jnp.pad(seed_proj, ((0, n_pad - N), (0, 0)))
    nt = n_pad // tn
    # N-tiles outer, batch inner: seed tile block index is constant across the
    # inner batch loop -> fetched once per N tile.  Total grid steps = nt*B >= B,
    # so v7x megacore has >= 2 parallel steps whenever B >= 2.
    grid = (nt, B)

    # bf16 weights for every MXU matmul (f32 accumulation inside the kernel).
    w2 = params["w2"].astype(jnp.bfloat16)
    w5 = params["w5"].astype(jnp.bfloat16)
    w3 = params["w3"].astype(jnp.bfloat16)
    w4d = params["w4d"].astype(jnp.bfloat16)
    w6 = params["w6"].astype(jnp.bfloat16)

    def const_spec(shape):
        return pl.BlockSpec(shape, lambda n, b: (0,) * len(shape))

    out = pl.pallas_call(
        foldingnet_kernel,
        out_shape=jax.ShapeDtypeStruct((B, n_pad, 3), jnp.float32),
        grid_spec=pltpu.PrefetchScalarGridSpec(
            num_scalar_prefetch=0,
            grid=grid,
            in_specs=[
                pl.BlockSpec((tn, HIDDEN), lambda n, b: (n, 0)),   # seed_proj tile
                const_spec((B, HIDDEN)),                           # feat1 (resident)
                const_spec((B, HIDDEN)),                           # feat2 (resident)
                const_spec((HIDDEN, HIDDEN)),                      # w2 (bf16)
                const_spec((1, HIDDEN)),                           # b2
                const_spec((HIDDEN, 3)),                           # w3 (bf16)
                const_spec((1, 3)),                                # b3
                const_spec((3, HIDDEN)),                           # w4d (bf16)
                const_spec((HIDDEN, HIDDEN)),                      # w5 (bf16)
                const_spec((1, HIDDEN)),                           # b5
                const_spec((HIDDEN, 3)),                           # w6 (bf16)
                const_spec((1, 3)),                                # b6
            ],
            out_specs=pl.BlockSpec((1, tn, 3), lambda n, b: (b, n, 0)),
        ),
        compiler_params=pltpu.CompilerParams(
            dimension_semantics=("parallel", "parallel"),
            vmem_limit_bytes=48 * 1024 * 1024),
    )(seed_proj, feat1, feat2,
      w2, params["b2"], w3, params["b3"],
      w4d, w5, params["b5"], w6, params["b6"])

    return out[:, :N, :]


# ------------------------- parameter construction -------------------------

def init_conv(key, cin, cout):
    """Deterministic Conv1d(k=1) init (PyTorch-style uniform bound)."""
    kw, kb = jax.random.split(key)
    bound = 1.0 / np.sqrt(cin)
    w = jax.random.uniform(kw, (cin, cout), jnp.float32, -bound, bound)
    b = jax.random.uniform(kb, (cout,), jnp.float32, -bound, bound)
    return w, b


def init_bn(key, c):
    kg, kb = jax.random.split(key)
    gamma = jax.random.uniform(kg, (c,), jnp.float32, 0.5, 1.5)
    beta = jax.random.uniform(kb, (c,), jnp.float32, -0.1, 0.1)
    return gamma, beta


def fold_bn(w, b, gamma, beta, eps=1e-5):
    # BatchNorm1d with fresh buffers: running_mean = 0, running_var = 1 (eval semantics).
    scale = gamma / jnp.sqrt(1.0 + eps)
    return w * scale[None, :], b * scale + beta


def make_params(key, encoder_channel):
    keys = jax.random.split(key, 10)
    # folding1
    w1, b1 = init_conv(keys[0], encoder_channel + 2, HIDDEN)
    g1, be1 = init_bn(keys[1], HIDDEN)
    w1, b1 = fold_bn(w1, b1, g1, be1)
    w2, b2 = init_conv(keys[2], HIDDEN, HIDDEN)
    g2, be2 = init_bn(keys[3], HIDDEN)
    w2, b2 = fold_bn(w2, b2, g2, be2)
    w3, b3 = init_conv(keys[4], HIDDEN, 3)
    # folding2
    w4, b4 = init_conv(keys[5], encoder_channel + 3, HIDDEN)
    g4, be4 = init_bn(keys[6], HIDDEN)
    w4, b4 = fold_bn(w4, b4, g4, be4)
    w5, b5 = init_conv(keys[7], HIDDEN, HIDDEN)
    g5, be5 = init_bn(keys[8], HIDDEN)
    w5, b5 = fold_bn(w5, b5, g5, be5)
    w6, b6 = init_conv(keys[9], HIDDEN, 3)

    return {
        "w1s": w1[:2], "w1f": w1[2:], "b1": b1[None, :],
        "w2": w2, "b2": b2[None, :],
        "w3": w3, "b3": b3[None, :],
        "w4d": w4[:3], "w4f": w4[3:], "b4": b4[None, :],
        "w5": w5, "b5": b5[None, :],
        "w6": w6, "b6": b6[None, :],
    }


def make_seed(grid_size):
    lin = jnp.linspace(-0.5, 0.5, grid_size, dtype=jnp.float32)
    a = jnp.tile(lin, grid_size)     # channel 0 of PyTorch folding_seed
    b = jnp.repeat(lin, grid_size)   # channel 1
    return jnp.stack([a, b], axis=1)  # (N, 2)


# ------------------------- plain-JAX f32 reference -------------------------

def reference_forward(feature_global, seed, params):
    B, C = feature_global.shape
    N = seed.shape[0]
    feats = jnp.broadcast_to(feature_global[:, None, :], (B, N, C))
    seed_b = jnp.broadcast_to(seed[None], (B, N, 2))

    w1 = jnp.concatenate([params["w1s"], params["w1f"]], axis=0)
    x = jnp.concatenate([seed_b, feats], axis=-1)
    h = jax.nn.relu(x @ w1 + params["b1"])
    h = jax.nn.relu(h @ params["w2"] + params["b2"])
    fd1 = h @ params["w3"] + params["b3"]

    w4 = jnp.concatenate([params["w4d"], params["w4f"]], axis=0)
    x2 = jnp.concatenate([fd1, feats], axis=-1)
    h2 = jax.nn.relu(x2 @ w4 + params["b4"])
    h2 = jax.nn.relu(h2 @ params["w5"] + params["b5"])
    fd2 = h2 @ params["w6"] + params["b6"]
    return fd2  # (B, N, 3) == PyTorch fd2.transpose(2, 1)


if __name__ == "__main__":
    num_pred = 16                      # -> grid_size = 4, num_sample = 16
    encoder_channel = 8
    batch = 2

    grid_size = int(num_pred ** 0.5 + 0.5)
    num_sample = grid_size * grid_size

    key = jax.random.PRNGKey(0)
    k_feat, k_params = jax.random.split(key)
    feature_global = jax.random.normal(k_feat, (batch, encoder_channel), dtype=jnp.float32)
    params = make_params(k_params, encoder_channel)
    seed = make_seed(grid_size)

    out = folding_net_forward(feature_global, seed, params)
    out = jax.block_until_ready(out)

    ref = reference_forward(feature_global, seed, params)
    assert out.shape == (batch, num_sample, 3)
    # All five matmuls use bf16 inputs (f32 accumulation) vs the f32 reference,
    # so the tolerance is slightly looser than v2's (which only had bf16 w2/w5).
    np.testing.assert_allclose(np.asarray(out), np.asarray(ref), rtol=3e-2, atol=3e-2)

    print("KERNEL_OK")
</pallas_src>

<mosaic_0001>
module attributes {stable_mosaic.version = 11 : i64} {
  func.func @foldingnet_kernel(%arg0: i32, %arg1: i32, %arg2: memref<16x512xf32, #tpu.memory_space<vmem>>, %arg3: memref<2x512xf32, #tpu.memory_space<vmem>>, %arg4: memref<2x512xf32, #tpu.memory_space<vmem>>, %arg5: memref<512x512xbf16, #tpu.memory_space<vmem>>, %arg6: memref<1x512xf32, #tpu.memory_space<vmem>>, %arg7: memref<512x3xbf16, #tpu.memory_space<vmem>>, %arg8: memref<1x3xf32, #tpu.memory_space<vmem>>, %arg9: memref<3x512xbf16, #tpu.memory_space<vmem>>, %arg10: memref<512x512xbf16, #tpu.memory_space<vmem>>, %arg11: memref<1x512xf32, #tpu.memory_space<vmem>>, %arg12: memref<512x3xbf16, #tpu.memory_space<vmem>>, %arg13: memref<1x3xf32, #tpu.memory_space<vmem>>, %arg14: memref<1x16x3xf32, #tpu.memory_space<vmem>>) attributes {dimension_semantics = [#tpu.dimension_semantics<parallel>, #tpu.dimension_semantics<parallel>], iteration_bounds = array<i64: 1, 2>, scalar_prefetch = 0 : i64, scratch_operands = 0 : i64, tpu.core_type = #tpu.core_type<tc>, window_params = [{transform_indices = @transform_0, window_bounds = array<i64: 16, 512>}, {pipeline_mode = #tpu.pipeline_mode<synchronous>, transform_indices = @transform_1, window_bounds = array<i64: 2, 512>}, {pipeline_mode = #tpu.pipeline_mode<synchronous>, transform_indices = @transform_2, window_bounds = array<i64: 2, 512>}, {pipeline_mode = #tpu.pipeline_mode<synchronous>, transform_indices = @transform_3, window_bounds = array<i64: 512, 512>}, {pipeline_mode = #tpu.pipeline_mode<synchronous>, transform_indices = @transform_4, window_bounds = array<i64: 1, 512>}, {pipeline_mode = #tpu.pipeline_mode<synchronous>, transform_indices = @transform_5, window_bounds = array<i64: 512, 3>}, {pipeline_mode = #tpu.pipeline_mode<synchronous>, transform_indices = @transform_6, window_bounds = array<i64: 1, 3>}, {pipeline_mode = #tpu.pipeline_mode<synchronous>, transform_indices = @transform_7, window_bounds = array<i64: 3, 512>}, {pipeline_mode = #tpu.pipeline_mode<synchronous>, transform_indices = @transform_8, window_bounds = array<i64: 512, 512>}, {pipeline_mode = #tpu.pipeline_mode<synchronous>, transform_indices = @transform_9, window_bounds = array<i64: 1, 512>}, {pipeline_mode = #tpu.pipeline_mode<synchronous>, transform_indices = @transform_10, window_bounds = array<i64: 512, 3>}, {pipeline_mode = #tpu.pipeline_mode<synchronous>, transform_indices = @transform_11, window_bounds = array<i64: 1, 3>}, {transform_indices = @transform_12, window_bounds = array<i64: 1, 16, 3>}]} {
    %0 = arith.index_cast %arg1 : i32 to index
    %c0 = arith.constant 0 : index
    %1 = vector.load %arg3[%0, %c0] : memref<2x512xf32, #tpu.memory_space<vmem>>, vector<1x512xf32>
    %2 = arith.index_cast %arg1 : i32 to index
    %c0_0 = arith.constant 0 : index
    %3 = vector.load %arg4[%2, %c0_0] : memref<2x512xf32, #tpu.memory_space<vmem>>, vector<1x512xf32>
    %c0_1 = arith.constant 0 : index
    %c0_2 = arith.constant 0 : index
    %4 = vector.load %arg2[%c0_1, %c0_2] : memref<16x512xf32, #tpu.memory_space<vmem>>, vector<16x512xf32>
    %5 = vector.broadcast %1 : vector<1x512xf32> to vector<16x512xf32>
    %6 = arith.addf %4, %5 : vector<16x512xf32>
    %cst = arith.constant 0.000000e+00 : f32
    %7 = vector.broadcast %cst : f32 to vector<16x512xf32>
    %8 = arith.maximumf %6, %7 : vector<16x512xf32>
    %9 = arith.truncf %8 : vector<16x512xf32> to vector<16x512xbf16>
    %c0_3 = arith.constant 0 : index
    %c0_4 = arith.constant 0 : index
    %10 = vector.load %arg5[%c0_3, %c0_4] : memref<512x512xbf16, #tpu.memory_space<vmem>>, vector<512x512xbf16>
    %cst_5 = arith.constant dense<0.000000e+00> : vector<16x512xf32>
    %11 = tpu.matmul %9, %10, %cst_5 {dimension_numbers = #tpu.dot_dimension_numbers<[1], [0], [0], [1], [0, 0, 1, 1], [], []>} : vector<16x512xbf16>, vector<512x512xbf16>, vector<16x512xf32> -> vector<16x512xf32>
    %c0_6 = arith.constant 0 : index
    %c0_7 = arith.constant 0 : index
    %12 = vector.load %arg6[%c0_6, %c0_7] : memref<1x512xf32, #tpu.memory_space<vmem>>, vector<1x512xf32>
    %13 = vector.broadcast %12 : vector<1x512xf32> to vector<16x512xf32>
    %14 = arith.addf %11, %13 : vector<16x512xf32>
    %cst_8 = arith.constant 0.000000e+00 : f32
    %15 = vector.broadcast %cst_8 : f32 to vector<16x512xf32>
    %16 = arith.maximumf %14, %15 : vector<16x512xf32>
    %17 = arith.truncf %16 : vector<16x512xf32> to vector<16x512xbf16>
    %c0_9 = arith.constant 0 : index
    %c0_10 = arith.constant 0 : index
    %18 = vector.load %arg7[%c0_9, %c0_10] : memref<512x3xbf16, #tpu.memory_space<vmem>>, vector<512x3xbf16>
    %cst_11 = arith.constant dense<0.000000e+00> : vector<16x3xf32>
    %19 = tpu.matmul %17, %18, %cst_11 {dimension_numbers = #tpu.dot_dimension_numbers<[1], [0], [0], [1], [0, 0, 1, 1], [], []>} : vector<16x512xbf16>, vector<512x3xbf16>, vector<16x3xf32> -> vector<16x3xf32>
    %c0_12 = arith.constant 0 : index
    %c0_13 = arith.constant 0 : index
    %20 = vector.load %arg8[%c0_12, %c0_13] : memref<1x3xf32, #tpu.memory_space<vmem>>, vector<1x3xf32>
    %21 = vector.broadcast %20 : vector<1x3xf32> to vector<16x3xf32>
    %22 = arith.addf %19, %21 : vector<16x3xf32>
    %23 = arith.truncf %22 : vector<16x3xf32> to vector<16x3xbf16>
    %c0_14 = arith.constant 0 : index
    %c0_15 = arith.constant 0 : index
    %24 = vector.load %arg9[%c0_14, %c0_15] : memref<3x512xbf16, #tpu.memory_space<vmem>>, vector<3x512xbf16>
    %cst_16 = arith.constant dense<0.000000e+00> : vector<16x512xf32>
    %25 = tpu.matmul %23, %24, %cst_16 {dimension_numbers = #tpu.dot_dimension_numbers<[1], [0], [0], [1], [0, 0, 1, 1], [], []>} : vector<16x3xbf16>, vector<3x512xbf16>, vector<16x512xf32> -> vector<16x512xf32>
    %26 = vector.broadcast %3 : vector<1x512xf32> to vector<16x512xf32>
    %27 = arith.addf %25, %26 : vector<16x512xf32>
    %cst_17 = arith.constant 0.000000e+00 : f32
    %28 = vector.broadcast %cst_17 : f32 to vector<16x512xf32>
    %29 = arith.maximumf %27, %28 : vector<16x512xf32>
    %30 = arith.truncf %29 : vector<16x512xf32> to vector<16x512xbf16>
    %c0_18 = arith.constant 0 : index
    %c0_19 = arith.constant 0 : index
    %31 = vector.load %arg10[%c0_18, %c0_19] : memref<512x512xbf16, #tpu.memory_space<vmem>>, vector<512x512xbf16>
    %cst_20 = arith.constant dense<0.000000e+00> : vector<16x512xf32>
    %32 = tpu.matmul %30, %31, %cst_20 {dimension_numbers = #tpu.dot_dimension_numbers<[1], [0], [0], [1], [0, 0, 1, 1], [], []>} : vector<16x512xbf16>, vector<512x512xbf16>, vector<16x512xf32> -> vector<16x512xf32>
    %c0_21 = arith.constant 0 : index
    %c0_22 = arith.constant 0 : index
    %33 = vector.load %arg11[%c0_21, %c0_22] : memref<1x512xf32, #tpu.memory_space<vmem>>, vector<1x512xf32>
    %34 = vector.broadcast %33 : vector<1x512xf32> to vector<16x512xf32>
    %35 = arith.addf %32, %34 : vector<16x512xf32>
    %cst_23 = arith.constant 0.000000e+00 : f32
    %36 = vector.broadcast %cst_23 : f32 to vector<16x512xf32>
    %37 = arith.maximumf %35, %36 : vector<16x512xf32>
    %38 = arith.truncf %37 : vector<16x512xf32> to vector<16x512xbf16>
    %c0_24 = arith.constant 0 : index
    %c0_25 = arith.constant 0 : index
    %39 = vector.load %arg12[%c0_24, %c0_25] : memref<512x3xbf16, #tpu.memory_space<vmem>>, vector<512x3xbf16>
    %cst_26 = arith.constant dense<0.000000e+00> : vector<16x3xf32>
    %40 = tpu.matmul %38, %39, %cst_26 {dimension_numbers = #tpu.dot_dimension_numbers<[1], [0], [0], [1], [0, 0, 1, 1], [], []>} : vector<16x512xbf16>, vector<512x3xbf16>, vector<16x3xf32> -> vector<16x3xf32>
    %c0_27 = arith.constant 0 : index
    %c0_28 = arith.constant 0 : index
    %41 = vector.load %arg13[%c0_27, %c0_28] : memref<1x3xf32, #tpu.memory_space<vmem>>, vector<1x3xf32>
    %42 = vector.broadcast %41 : vector<1x3xf32> to vector<16x3xf32>
    %43 = arith.addf %40, %42 : vector<16x3xf32>
    %44 = vector.shape_cast %43 : vector<16x3xf32> to vector<1x16x3xf32>
    %c0_29 = arith.constant 0 : index
    %c0_30 = arith.constant 0 : index
    %c0_31 = arith.constant 0 : index
    %45 = vector.load %arg14[%c0_29, %c0_30, %c0_31] : memref<1x16x3xf32, #tpu.memory_space<vmem>>, vector<1x16x3xf32>
    tpu.vector_store %arg14[%c0_29, %c0_30, %c0_31], %44 {strides = array<i32>} : memref<1x16x3xf32, #tpu.memory_space<vmem>>, vector<1x16x3xf32>,
    return
  }
  func.func @transform_0(%arg0: i32, %arg1: i32) -> (i32, i32) {
    %c0_i32 = arith.constant 0 : i32
    %c0_i32_0 = arith.constant 0 : i32
    return %arg0, %c0_i32 : i32, i32
  }
  func.func @transform_1(%arg0: i32, %arg1: i32) -> (i32, i32) {
    %c0_i32 = arith.constant 0 : i32
    %c0_i32_0 = arith.constant 0 : i32
    %c0_i32_1 = arith.constant 0 : i32
    return %c0_i32, %c0_i32_0 : i32, i32
  }
  func.func @transform_2(%arg0: i32, %arg1: i32) -> (i32, i32) {
    %c0_i32 = arith.constant 0 : i32
    %c0_i32_0 = arith.constant 0 : i32
    %c0_i32_1 = arith.constant 0 : i32
    return %c0_i32, %c0_i32_0 : i32, i32
  }
  func.func @transform_3(%arg0: i32, %arg1: i32) -> (i32, i32) {
    %c0_i32 = arith.constant 0 : i32
    %c0_i32_0 = arith.constant 0 : i32
    %c0_i32_1 = arith.constant 0 : i32
    return %c0_i32, %c0_i32_0 : i32, i32
  }
  func.func @transform_4(%arg0: i32, %arg1: i32) -> (i32, i32) {
    %c0_i32 = arith.constant 0 : i32
    %c0_i32_0 = arith.constant 0 : i32
    %c0_i32_1 = arith.constant 0 : i32
    return %c0_i32, %c0_i32_0 : i32, i32
  }
  func.func @transform_5(%arg0: i32, %arg1: i32) -> (i32, i32) {
    %c0_i32 = arith.constant 0 : i32
    %c0_i32_0 = arith.constant 0 : i32
    %c0_i32_1 = arith.constant 0 : i32
    return %c0_i32, %c0_i32_0 : i32, i32
  }
  func.func @transform_6(%arg0: i32, %arg1: i32) -> (i32, i32) {
    %c0_i32 = arith.constant 0 : i32
    %c0_i32_0 = arith.constant 0 : i32
    %c0_i32_1 = arith.constant 0 : i32
    return %c0_i32, %c0_i32_0 : i32, i32
  }
  func.func @transform_7(%arg0: i32, %arg1: i32) -> (i32, i32) {
    %c0_i32 = arith.constant 0 : i32
    %c0_i32_0 = arith.constant 0 : i32
    %c0_i32_1 = arith.constant 0 : i32
    return %c0_i32, %c0_i32_0 : i32, i32
  }
  func.func @transform_8(%arg0: i32, %arg1: i32) -> (i32, i32) {
    %c0_i32 = arith.constant 0 : i32
    %c0_i32_0 = arith.constant 0 : i32
    %c0_i32_1 = arith.constant 0 : i32
    return %c0_i32, %c0_i32_0 : i32, i32
  }
  func.func @transform_9(%arg0: i32, %arg1: i32) -> (i32, i32) {
    %c0_i32 = arith.constant 0 : i32
    %c0_i32_0 = arith.constant 0 : i32
    %c0_i32_1 = arith.constant 0 : i32
    return %c0_i32, %c0_i32_0 : i32, i32
  }
  func.func @transform_10(%arg0: i32, %arg1: i32) -> (i32, i32) {
    %c0_i32 = arith.constant 0 : i32
    %c0_i32_0 = arith.constant 0 : i32
    %c0_i32_1 = arith.constant 0 : i32
    return %c0_i32, %c0_i32_0 : i32, i32
  }
  func.func @transform_11(%arg0: i32, %arg1: i32) -> (i32, i32) {
    %c0_i32 = arith.constant 0 : i32
    %c0_i32_0 = arith.constant 0 : i32
    %c0_i32_1 = arith.constant 0 : i32
    return %c0_i32, %c0_i32_0 : i32, i32
  }
  func.func @transform_12(%arg0: i32, %arg1: i32) -> (i32, i32, i32) {
    %c0_i32 = arith.constant 0 : i32
    %c0_i32_0 = arith.constant 0 : i32
    return %arg1, %arg0, %c0_i32 : i32, i32, i32
  }
}

</mosaic_0001>

<bundles_post_ra>
// kernel: tpu_custom_call.1
= control target key start
LH: loop header
LB: loop body
LE: loop exit
PB: predicated region body
PF: predicated region fallthrough
CT: control target
= control target key end

     0   :  { %17 = vsyncpa [#allocation3], 0  ;;  %s4962_s0 = inlined_call_operand.vmem [shape: f32[16,512], index: 0, kind: input, shape index: {}]   ;;  %s4963_s1 = inlined_call_operand.vmem [shape: f32[2,512], index: 1, kind: input, shape index: {}]   ;;  %s4964_s2 = inlined_call_operand.vmem [shape: f32[2,512], index: 2, kind: input, shape index: {}]   ;;  %s4965_s3 = inlined_call_operand.hbm [shape: bf16[512,512], index: 3, kind: input, shape index: {}]   ;;  %s4966_s4 = inlined_call_operand.vmem [shape: f32[1,512], index: 4, kind: input, shape index: {}]   ;;  %s4967_s5 = inlined_call_operand.vmem [shape: bf16[512,3], index: 5, kind: input, shape index: {}]   ;;  %s4968_s6 = inlined_call_operand.vmem [shape: f32[1,3], index: 6, kind: input, shape index: {}]   ;;  %s4969_s7 = inlined_call_operand.vmem [shape: bf16[3,512], index: 7, kind: input, shape index: {}]   ;;  %s4970_s8 = inlined_call_operand.hbm [shape: bf16[512,512], index: 8, kind: input, shape index: {}]   ;;  %s4971_s9 = inlined_call_operand.vmem [shape: f32[1,512], index: 9, kind: input, shape index: {}]   ;;  %s4972_s10 = inlined_call_operand.vmem [shape: bf16[512,3], index: 10, kind: input, shape index: {}]   ;;  %s4973_s11 = inlined_call_operand.vmem [shape: f32[1,3], index: 11, kind: input, shape index: {}]   ;;  %s4974_s12 = inlined_call_operand.vmem [shape: f32[2,16,3], index: 12, kind: output, shape index: {}]  }
   0x1   :  { %18 = vsyncpa [#allocation5], 0  ;;  %s4564_s21 = smov 0   ;;  %s4566_s22 = smov 0  }
   0x2   :  { %s4568_s23 = smov 0  }
   0x3 LB: > { %4979 = sst [smem:[#allocation8_spill]] %s4486_s22  ;;  %s3444_s24 = sadd.s32 4294967295, %s4490_s23   ;;  %s4490_s23 = sphi %s4568_s23, %s24_s23   ;;  %s4486_s22 = sphi %s4566_s22, %s4987_s22   ;;  %s4482_s21 = sphi %s4564_s21, %s4986_s21  }
   0x4   : > { %s33_s25 = sadd.s32 1, %s4486_s22  ;;  %p3446_p1 = scmp.ge.s32.totalorder %s4490_s23, 1 }
   0x5   : > { %p34_p0 = scmp.ge.s32.totalorder %s33_s25, 2  ;;  %p326_p2 = scmp.lt.s32.totalorder %s4490_s23, 3 }
   0x6   : > { %p4589_p4 = scmp.eq.s32.totalorder %s3444_s24, 0  ;;  %s4492_s28 = smov [#allocation2]  }
   0x7   : > { %s4989_s25 = smov (%p34_p0, %s33_s25), 0  ;;  %p4585_p3 = pnand %p3446_p1, %p326_p2 }
   0x8   : > { %4980 = sst [smem:[#allocation9_spill]] %s4989_s25  ;;  %s354_s29 = sshll.u32 %s4492_s28, 4  ;;  %s355_s29 = int_to_ptr.vmem [resolvable:$true] %s354_s29 }
   0x9   : > { %s4981_s26 = scalar_select %p4585_p3, 1, 0 }
   0xa   : > { %s4982_s27 = scalar_select %p4589_p4, 1, 0 }
   0xb   : > { %p3913_p5 = pneg %p4585_p3  ;;  %s4493_s13 = smov [#allocation4]  }
   0xc   : > { %s379_s14 = sshll.u32 %s4493_s13, 4  ;;  %s4404_s17 = scalar_lea.hbm %s4965_s3, 16384  ;;  %s4601_s14 = int_to_ptr.vmem [resolvable:$true] %s379_s14 }
   0xd   : > { %p4597_p6 = pnand %p4589_p4, %p3913_p5  ;;  %p4405_p7 = scmp.ne.s32.totalorder %s4965_s3, %s4404_s17 }
   0xe   : > { %p4411_p11 = scmp.lt.u32.totalorder %s4404_s17, %s4965_s3 }
   0xf   : > { %p4406_p8 = pneg %p4597_p6 }
  0x11   : > { %p4407_p9 = pnand %p4406_p8, %p4405_p7 }
  0x13   : > { %p4408_p10 = pneg %p4407_p9 }
  0x15   : > { %p4413_p12 = pnand %p4411_p11, %p4408_p10 }
  0x17   : > { %4416 = shalt.err (!%p4413_p12)
}
  0x18   : > { %s4417_s28 = scalar_lea.vmem %s355_s29, 16384  ;;  %p4425_p2 = scmp.lt.s32.totalorder %s355_s29, %s355_s29 }
  0x19   : > { %p4418_p13 = scmp.ne.s32.totalorder %s355_s29, %s4417_s28  ;;  %p4426_p5 = scmp.lt.s32.totalorder %s4417_s28, %s4417_s28 }
  0x1b   : > { %p4420_p0 = pnand %p4418_p13, %p4406_p8  ;;  %p4427_p4 = por %p4426_p5, %p4425_p2 }
  0x1d   : > { %p4421_p1 = pneg %p4420_p0 }
  0x1f   : > { %p4428_p3 = pnand %p4427_p4, %p4421_p1 }
  0x21   : > { %4431 = shalt.err (!%p4428_p3)
}
  0x22   : > { %s4494_s13 = smov 256   ;;  %s4495_s15 = smov 16  }
  0x23   : > { %3916 = dma.hbm_to_vmem [thread:$0]  (!%p4597_p6), %s4965_s3, 16384, %s355_s29, [#allocation3], %s4494_s13, %s4494_s13, %s4495_s15  }
  0x24   : > { %s4432_s20 = scalar_lea.hbm %s4970_s8, 16384 }
  0x25   : > { %p4433_p7 = scmp.ne.s32.totalorder %s4970_s8, %s4432_s20  ;;  %p4439_p9 = scmp.lt.u32.totalorder %s4432_s20, %s4970_s8 }
  0x27   : > { %p4435_p3 = pnand %p4433_p7, %p4406_p8 }
  0x29   : > { %p4436_p4 = pneg %p4435_p3 }
  0x2b   : > { %p4441_p10 = pnand %p4439_p9, %p4436_p4 }
  0x2d   : > { %4444 = shalt.err (!%p4441_p10)
}
  0x2e   : > { %s4445_s29 = scalar_lea.vmem %s4601_s14, 16384  ;;  %p4453_p0 = scmp.lt.s32.totalorder %s4601_s14, %s4601_s14 }
  0x2f   : > { %p4446_p11 = scmp.ne.s32.totalorder %s4601_s14, %s4445_s29  ;;  %p4454_p1 = scmp.lt.s32.totalorder %s4445_s29, %s4445_s29 }
  0x31   : > { %p4448_p12 = pnand %p4446_p11, %p4406_p8  ;;  %p4455_p2 = por %p4454_p1, %p4453_p0 }
  0x33   : > { %p4449_p13 = pneg %p4448_p12 }
  0x35   : > { %p4456_p5 = pnand %p4455_p2, %p4449_p13 }
  0x37   : > { %4459 = shalt.err (!%p4456_p5)
}
  0x38   : > { %3919 = dma.hbm_to_vmem [thread:$0]  (!%p4597_p6), %s4970_s8, 16384, %s4601_s14, [#allocation5], %s4494_s13, %s4494_s13, %s4495_s15  }
  0x39   : > { %p4984_p7 = scmp.ne.s32.totalorder %s4981_s26, 0 }
  0x3a   : > { %p4985_p3 = scmp.ne.s32.totalorder (!%p4984_p7), %s4982_s27, 0 }
  0x3b   : > { %404 = sbr.rel (%p4984_p7) target bundleno = 1373 (0x55d), region = 68 }
  0x42   : > { %4473 = dma.done.wait (%p4985_p3), [#allocation3], 16384  }
  0x43   : > { %4475 = vsyncadd (%p4985_p3), [#allocation3], 4294950912 }
  0x44   : > { %4477 = dma.done.wait (%p4985_p3), [#allocation5], 16384  }
  0x45   : > { %4479 = vsyncadd (%p4985_p3), [#allocation5], 4294950912  ;;  %v3955_v0 = vld [vmem:[#allocation2 + $0x4] ss:$16 sps:$4 sm:$0xff]   ;;  %v3957_v1 = vld [vmem:[#allocation2 + $0xc] ss:$16 sps:$4 sm:$0xff]   ;;  %v493_v37 = vlaneseq }
  0x46   : > { %1323 = vmatprep.subr.bf16.mxu0 %v3955_v0  ;;  %v3959_v2 = vld [vmem:[#allocation2] ss:$16 sps:$4 sm:$0xff]   ;;  %v3960_v3 = vld [vmem:[#allocation2 + $0x8] ss:$16 sps:$4 sm:$0xff]   ;;  %1409 = vmatprep.subr.bf16.mxu1 %v3957_v1  ;;  %v3961_v4 = vld [vmem:[#allocation2 + $0x24] ss:$16 sps:$4 sm:$0xff]  }
  0x47   : > { %1324 = vmatpush1.bf16.msra.mxu0 %v3959_v2  ;;  %1410 = vmatpush1.bf16.msra.mxu1 %v3960_v3  ;;  %v3963_v5 = vld [vmem:[#allocation2 + $0x2c] ss:$16 sps:$4 sm:$0xff]   ;;  %v3965_v6 = vld [vmem:[#allocation2 + $0x20] ss:$16 sps:$4 sm:$0xff]   ;;  %v3966_v7 = vld [vmem:[#allocation2 + $0x28] ss:$16 sps:$4 sm:$0xff]  }
  0x48   : > { %1325 = vmatprep.subr.bf16.mxu0 %v3961_v4  ;;  %1411 = vmatprep.subr.bf16.mxu1 %v3963_v5  ;;  %v3967_v8 = vld [vmem:[#allocation2 + $0x44] ss:$16 sps:$4 sm:$0xff]   ;;  %v3969_v9 = vld [vmem:[#allocation2 + $0x4c] ss:$16 sps:$4 sm:$0xff]   ;;  %v3971_v10 = vld [vmem:[#allocation2 + $0x40] ss:$16 sps:$4 sm:$0xff]  }
  0x49   : > { %v3972_v11 = vld [vmem:[#allocation2 + $0x48] ss:$16 sps:$4 sm:$0xff]   ;;  %v3973_v12 = vld [vmem:[#allocation2 + $0x64] ss:$16 sps:$4 sm:$0xff]   ;;  %v3975_v13 = vld [vmem:[#allocation2 + $0x6c] ss:$16 sps:$4 sm:$0xff]  }
  0x4a   : > { %v3977_v14 = vld [vmem:[#allocation2 + $0x60] ss:$16 sps:$4 sm:$0xff]   ;;  %v3978_v15 = vld [vmem:[#allocation2 + $0x68] ss:$16 sps:$4 sm:$0xff]   ;;  %v3979_v16 = vld [vmem:[#allocation2 + $0x84] ss:$16 sps:$4 sm:$0xff]  }
  0x4b   : > { %1326 = vmatpush1.bf16.msra.mxu0 %v3965_v6  ;;  %1412 = vmatpush1.bf16.msra.mxu1 %v3966_v7  ;;  %v3981_v17 = vld [vmem:[#allocation2 + $0x8c] ss:$16 sps:$4 sm:$0xff]   ;;  %v3983_v18 = vld [vmem:[#allocation2 + $0x80] ss:$16 sps:$4 sm:$0xff]   ;;  %v3984_v19 = vld [vmem:[#allocation2 + $0x88] ss:$16 sps:$4 sm:$0xff]  }
  0x4c   : > { %1327 = vmatprep.subr.bf16.mxu0 %v3967_v8  ;;  %1413 = vmatprep.subr.bf16.mxu1 %v3969_v9  ;;  %v3985_v20 = vld [vmem:[#allocation2 + $0xa4] ss:$16 sps:$4 sm:$0xff]   ;;  %v3987_v21 = vld [vmem:[#allocation2 + $0xac] ss:$16 sps:$4 sm:$0xff]   ;;  %v3989_v22 = vld [vmem:[#allocation2 + $0xa0] ss:$16 sps:$4 sm:$0xff]  }
  0x4d   : > { %v3990_v23 = vld [vmem:[#allocation2 + $0xa8] ss:$16 sps:$4 sm:$0xff]   ;;  %v3991_v24 = vld [vmem:[#allocation2 + $0xc4] ss:$16 sps:$4 sm:$0xff]   ;;  %v3993_v25 = vld [vmem:[#allocation2 + $0xcc] ss:$16 sps:$4 sm:$0xff]  }
  0x4e   : > { %v3995_v26 = vld [vmem:[#allocation2 + $0xc0] ss:$16 sps:$4 sm:$0xff]   ;;  %v3996_v27 = vld [vmem:[#allocation2 + $0xc8] ss:$16 sps:$4 sm:$0xff]   ;;  %v3997_v28 = vld [vmem:[#allocation2 + $0xe4] ss:$16 sps:$4 sm:$0xff]  }
  0x4f   : > { %1328 = vmatpush1.bf16.msra.mxu0 %v3971_v10  ;;  %1414 = vmatpush1.bf16.msra.mxu1 %v3972_v11  ;;  %v3999_v29 = vld [vmem:[#allocation2 + $0xec] ss:$16 sps:$4 sm:$0xff]   ;;  %v4001_v30 = vld [vmem:[#allocation2 + $0xe0] ss:$16 sps:$4 sm:$0xff]   ;;  %v4002_v31 = vld [vmem:[#allocation2 + $0xe8] ss:$16 sps:$4 sm:$0xff]  }
  0x50   : > { %1329 = vmatprep.subr.bf16.mxu0 %v3973_v12  ;;  %1415 = vmatprep.subr.bf16.mxu1 %v3975_v13  ;;  %v4003_v32 = vld [vmem:[#allocation2 + $0x104] ss:$16 sps:$4 sm:$0xff]   ;;  %v4005_v33 = vld [vmem:[#allocation2 + $0x10c] ss:$16 sps:$4 sm:$0xff]   ;;  %v4007_v34 = vld [vmem:[#allocation2 + $0x100] ss:$16 sps:$4 sm:$0xff]  }
  0x51   : > { %v4008_v35 = vld [vmem:[#allocation2 + $0x108] ss:$16 sps:$4 sm:$0xff]   ;;  %s473_s26 = sshra.s32 %s4482_s21, 1  ;;  %v4009_v36 = vld [vmem:[#allocation2 + $0x124] ss:$16 sps:$4 sm:$0xff]   ;;  %s476_s27 = sand.u32 1, %s4482_s21 }
  0x52   : > { %v4011_v38 = vld [vmem:[#allocation2 + $0x12c] ss:$16 sps:$4 sm:$0xff]   ;;  %s3784_s30 = sshll.u32 %s473_s26, 3  ;;  %v4013_v39 = vld [vmem:[#allocation2 + $0x120] ss:$16 sps:$4 sm:$0xff]   ;;  %v4662_v42 = vshrl.u32 %v493_v37, 7 }
  0x53   : > { %1330 = vmatpush1.bf16.msra.mxu0 %v3977_v14  ;;  %1416 = vmatpush1.bf16.msra.mxu1 %v3978_v15  ;;  %v4014_v40 = vld [vmem:[#allocation2 + $0x128] ss:$16 sps:$4 sm:$0xff]   ;;  %v4015_v41 = vld [vmem:[#allocation2 + $0x144] ss:$16 sps:$4 sm:$0xff]   ;;  %v4017_v43 = vld [vmem:[#allocation2 + $0x14c] ss:$16 sps:$4 sm:$0xff]   ;;  %s4664_s14 = sadd.s32 %s3784_s30, %s476_s27 }
  0x54   : > { %1331 = vmatprep.subr.bf16.mxu0 %v3979_v16  ;;  %1417 = vmatprep.subr.bf16.mxu1 %v3981_v17  ;;  %v4019_v44 = vld [vmem:[#allocation2 + $0x140] ss:$16 sps:$4 sm:$0xff]   ;;  %v4020_v45 = vld [vmem:[#allocation2 + $0x148] ss:$16 sps:$4 sm:$0xff]   ;;  %v4021_v46 = vld [vmem:[#allocation2 + $0x164] ss:$16 sps:$4 sm:$0xff]   ;;  %s480_s16 = scalar_lea.vmem %s4963_s1, %s4664_s14  ;;  %s482_s15 = scalar_lea.vmem %s4964_s2, %s4664_s14 }
  0x55   : > { %v4671_v47 = vsub.s32 1, %v4662_v42  ;;  %v4023_v48 = vld [vmem:[#allocation2 + $0x16c] ss:$16 sps:$4 sm:$0xff]   ;;  %v4025_v49 = vld [vmem:[#allocation2 + $0x160] ss:$16 sps:$4 sm:$0xff]   ;;  %v4684_v60 = vsub.s32 0, %v4662_v42 }
  0x56   : > { %v485_v50 = vld [vmem:[%s4962_s0 + $0x8] sm:$0xff]  ;;  %v4676_v51 = vld [vmem:[%s480_s16] ss:$2 sm:$0xf]  ;;  %vm1897_vm0 = vcmask 1040384   ;;  %vm1898_vm1 = vcmask 1041408  }
  0x57   : > { %1332 = vmatpush1.bf16.msra.mxu0 %v3983_v18  ;;  %1418 = vmatpush1.bf16.msra.mxu1 %v3984_v19  ;;  %v489_v52 = vld [vmem:[%s4962_s0 + $0x28] sm:$0xff]  ;;  %v4027_v54 = vld [vmem:[#allocation2 + $0x184] ss:$16 sps:$4 sm:$0xff]   ;;  %v500_v55 = vrot.slane %v4676_v51, %v4671_v47  ;;  %v4031_v59 = vld [vmem:[#allocation2 + $0x180] ss:$16 sps:$4 sm:$0xff]   ;;  %v496_v5 = vrot.slane %v4676_v51, %v4684_v60  ;;  %vm1893_vm2 = vcmask 23552  }
  0x58   : > { %1333 = vmatprep.subr.bf16.mxu0 %v3985_v20  ;;  %1419 = vmatprep.subr.bf16.mxu1 %v3987_v21  ;;  %v4026_v53 = vld [vmem:[#allocation2 + $0x168] ss:$16 sps:$4 sm:$0xff]   ;;  %v4029_v56 = vld [vmem:[#allocation2 + $0x18c] ss:$16 sps:$4 sm:$0xff]   ;;  %v4033_v0 = vld [vmem:[#allocation2 + $0x1a4] ss:$16 sps:$4 sm:$0xff]  }
  0x59   : > { %v514_v57 = vadd.f32 %v500_v55, %v485_v50  ;;  %v518_v58 = vadd.f32 %v500_v55, %v489_v52  ;;  %v4032_v61 = vld [vmem:[#allocation2 + $0x188] ss:$16 sps:$4 sm:$0xff]   ;;  %v4035_v1 = vld [vmem:[#allocation2 + $0x1ac] ss:$16 sps:$4 sm:$0xff]   ;;  %v4037_v2 = vld [vmem:[#allocation2 + $0x1a0] ss:$16 sps:$4 sm:$0xff]  }
  0x5a   : > { %v4038_v4 = vld [vmem:[#allocation2 + $0x1a8] ss:$16 sps:$4 sm:$0xff]   ;;  %v484_v6 = vld [vmem:[%s4962_s0] sm:$0xff]  ;;  %v4041_v9 = vld [vmem:[#allocation2 + $0x1cc] ss:$16 sps:$4 sm:$0xff]   ;;  %v4706_v55 = vsub.s32 2, %v4662_v42 }
  0x5b   : > { %1334 = vmatpush1.bf16.msra.mxu0 %v3989_v22  ;;  %1420 = vmatpush1.bf16.msra.mxu1 %v3990_v23  ;;  %v522_v62 = vmax.f32 %v514_v57, 0.0  ;;  %v526_v63 = vmax.f32 %v518_v58, 0.0  ;;  %v488_v7 = vld [vmem:[%s4962_s0 + $0x20] sm:$0xff]  ;;  %v513_v10 = vadd.f32 %v496_v5, %v484_v6  ;;  %v4044_v13 = vld [vmem:[#allocation2 + $0x1c8] ss:$16 sps:$4 sm:$0xff]   ;;  %p463_p6 = scmp.lt.s32.totalorder %s4482_s21, 1 }
  0x5c   : > { %1335 = vmatprep.subr.bf16.mxu0 %v3991_v24  ;;  %1421 = vmatprep.subr.bf16.mxu1 %v3993_v25  ;;  %v4039_v8 = vld [vmem:[#allocation2 + $0x1c4] ss:$16 sps:$4 sm:$0xff]   ;;  %v517_v11 = vadd.f32 %v496_v5, %v488_v7  ;;  %v4043_v12 = vld [vmem:[#allocation2 + $0x1c0] ss:$16 sps:$4 sm:$0xff]   ;;  %v4047_v15 = vld [vmem:[#allocation2 + $0x1ec] ss:$16 sps:$4 sm:$0xff]  }
  0x5d   : > { %v530_v3 = vpack.c.bf16 %v526_v63, %v522_v62  ;;  %v4045_v14 = vld [vmem:[#allocation2 + $0x1e4] ss:$16 sps:$4 sm:$0xff]   ;;  %v521_v16 = vmax.f32 %v513_v10, 0.0  ;;  %v4049_v18 = vld [vmem:[#allocation2 + $0x1e0] ss:$16 sps:$4 sm:$0xff]   ;;  %s4991_s21 = smov (!%p463_p6, %s4482_s21), 1 }
  0x5e   : > { %v525_v17 = vmax.f32 %v517_v11, 0.0  ;;  %v4050_v19 = vld [vmem:[#allocation2 + $0x1e8] ss:$16 sps:$4 sm:$0xff]   ;;  %v4053_v20 = vld [vmem:[#allocation2 + $0x204] ss:$16 sps:$4 sm:$0xff]   ;;  %s3783_s19 = sshll.u32 %s4991_s21, 4 }
  0x5f   : > { %1336 = vmatpush1.bf16.msra.mxu0 %v3995_v26  ;;  %1422 = vmatpush1.bf16.msra.mxu1 %v3996_v27  ;;  %v4056_v21 = vld [vmem:[#allocation2 + $0x20c] ss:$16 sps:$4 sm:$0xff]   ;;  %v4051_v23 = vld [vmem:[#allocation2 + $0x200] ss:$16 sps:$4 sm:$0xff]   ;;  %v4054_v24 = vld [vmem:[#allocation2 + $0x208] ss:$16 sps:$4 sm:$0xff]   ;;  %s470_s28 = scalar_lea.vmem %s4974_s12, %s3783_s19 }
  0x60   : > { %1337 = vmatprep.subr.bf16.mxu0 %v3997_v28  ;;  %1423 = vmatprep.subr.bf16.mxu1 %v3999_v29  ;;  %v529_v22 = vpack.c.bf16 %v525_v17, %v521_v16  ;;  %v4059_v25 = vld [vmem:[#allocation2 + $0x224] ss:$16 sps:$4 sm:$0xff]   ;;  %v4062_v26 = vld [vmem:[#allocation2 + $0x22c] ss:$16 sps:$4 sm:$0xff]   ;;  %v4057_v27 = vld [vmem:[#allocation2 + $0x220] ss:$16 sps:$4 sm:$0xff]  }
  0x61   : > { %1355 = vmatprep.mubr.bf16.mxu0 %v530_v3  ;;  %1441 = vmatprep.mubr.bf16.mxu1 %v530_v3  ;;  %v4060_v28 = vld [vmem:[#allocation2 + $0x228] ss:$16 sps:$4 sm:$0xff]   ;;  %v4065_v29 = vld [vmem:[#allocation2 + $0x244] ss:$16 sps:$4 sm:$0xff]   ;;  %v4092_v50 = vld [vmem:[#allocation2 + $0x2cc] ss:$16 sps:$4 sm:$0xff]  }
  0x62   : > { %v4077_v37 = vld [vmem:[#allocation2 + $0x284] ss:$16 sps:$4 sm:$0xff]   ;;  %v4087_v52 = vld [vmem:[#allocation2 + $0x2c0] ss:$16 sps:$4 sm:$0xff]   ;;  %v4102_v6 = vld [vmem:[#allocation2 + $0x308] ss:$16 sps:$4 sm:$0xff]  }
  0x63   : > { %1338 = vmatpush1.bf16.msra.mxu0 %v4001_v30  ;;  %1424 = vmatpush1.bf16.msra.mxu1 %v4002_v31  ;;  %v4068_v30 = vld [vmem:[#allocation2 + $0x24c] ss:$16 sps:$4 sm:$0xff]   ;;  %v4063_v31 = vld [vmem:[#allocation2 + $0x240] ss:$16 sps:$4 sm:$0xff]   ;;  %v4095_v57 = vld [vmem:[#allocation2 + $0x2e4] ss:$16 sps:$4 sm:$0xff]  }
  0x64   : > { %1339 = vmatprep.subr.bf16.mxu0 %v4003_v32  ;;  %1425 = vmatprep.subr.bf16.mxu1 %v4005_v33  ;;  %v4066_v32 = vld [vmem:[#allocation2 + $0x248] ss:$16 sps:$4 sm:$0xff]   ;;  %v4071_v33 = vld [vmem:[#allocation2 + $0x264] ss:$16 sps:$4 sm:$0xff]   ;;  %v4093_v62 = vld [vmem:[#allocation2 + $0x2e0] ss:$16 sps:$4 sm:$0xff]  }
  0x65   : > { %v4099_v5 = vld [vmem:[#allocation2 + $0x300] ss:$16 sps:$4 sm:$0xff]   ;;  %v4107_v7 = vld [vmem:[#allocation2 + $0x324] ss:$16 sps:$4 sm:$0xff]   ;;  %v4108_v10 = vld [vmem:[#allocation2 + $0x328] ss:$16 sps:$4 sm:$0xff]  }
  0x66   : > { %v4113_v11 = vld [vmem:[#allocation2 + $0x344] ss:$16 sps:$4 sm:$0xff]   ;;  %v4122_v16 = vld [vmem:[#allocation2 + $0x36c] ss:$16 sps:$4 sm:$0xff]   ;;  %v4117_v17 = vld [vmem:[#allocation2 + $0x360] ss:$16 sps:$4 sm:$0xff]  }
  0x67   : > { %1340 = vmatpush1.bf16.msra.mxu0 %v4007_v34  ;;  %1426 = vmatpush1.bf16.msra.mxu1 %v4008_v35  ;;  %v4074_v34 = vld [vmem:[#allocation2 + $0x26c] ss:$16 sps:$4 sm:$0xff]   ;;  %v4069_v35 = vld [vmem:[#allocation2 + $0x260] ss:$16 sps:$4 sm:$0xff]  }
  0x68   : > { %1341 = vmatprep.subr.bf16.mxu0 %v4009_v36  ;;  %1427 = vmatprep.subr.bf16.mxu1 %v4011_v38  ;;  %v4072_v36 = vld [vmem:[#allocation2 + $0x268] ss:$16 sps:$4 sm:$0xff]   ;;  %v4080_v38 = vld [vmem:[#allocation2 + $0x28c] ss:$16 sps:$4 sm:$0xff]  }
  0x6b   : > { %1342 = vmatpush1.bf16.msra.mxu0 %v4013_v39  ;;  %1428 = vmatpush1.bf16.msra.mxu1 %v4014_v40  ;;  %v4075_v39 = vld [vmem:[#allocation2 + $0x280] ss:$16 sps:$4 sm:$0xff]   ;;  %v4078_v40 = vld [vmem:[#allocation2 + $0x288] ss:$16 sps:$4 sm:$0xff]  }
  0x6c   : > { %1343 = vmatprep.subr.bf16.mxu0 %v4015_v41  ;;  %1429 = vmatprep.subr.bf16.mxu1 %v4017_v43  ;;  %v4695_v41 = vsub.s32 3, %v4662_v42  ;;  %v4083_v43 = vld [vmem:[#allocation2 + $0x2a4] ss:$16 sps:$4 sm:$0xff]  }
  0x6f   : > { %1344 = vmatpush1.bf16.msra.mxu0 %v4019_v44  ;;  %1430 = vmatpush1.bf16.msra.mxu1 %v4020_v45  ;;  %v4086_v44 = vld [vmem:[#allocation2 + $0x2ac] ss:$16 sps:$4 sm:$0xff]   ;;  %v4081_v45 = vld [vmem:[#allocation2 + $0x2a0] ss:$16 sps:$4 sm:$0xff]  }
  0x70   : > { %1345 = vmatprep.subr.bf16.mxu0 %v4021_v46  ;;  %1431 = vmatprep.subr.bf16.mxu1 %v4023_v48  ;;  %v4084_v46 = vld [vmem:[#allocation2 + $0x2a8] ss:$16 sps:$4 sm:$0xff]   ;;  %v508_v48 = vrot.slane %v4676_v51, %v4695_v41 }
  0x73   : > { %1346 = vmatpush1.bf16.msra.mxu0 %v4025_v49  ;;  %1432 = vmatpush1.bf16.msra.mxu1 %v4026_v53  ;;  %v4089_v49 = vld [vmem:[#allocation2 + $0x2c4] ss:$16 sps:$4 sm:$0xff]   ;;  %v487_v53 = vld [vmem:[%s4962_s0 + $0x18] sm:$0xff] }
  0x74   : > { %1347 = vmatprep.subr.bf16.mxu0 %v4027_v54  ;;  %1433 = vmatprep.subr.bf16.mxu1 %v4029_v56  ;;  %v491_v54 = vld [vmem:[%s4962_s0 + $0x38] sm:$0xff]  ;;  %v516_v58 = vadd.f32 %v508_v48, %v487_v53  ;;  %v4154_v53 = vld [vmem:[%s4967_s5 + $0x88] sm:$0xff]  }
  0x75   : > { %v4090_v56 = vld [vmem:[#allocation2 + $0x2c8] ss:$16 sps:$4 sm:$0xff]  }
  0x76   : > { %v524_v63 = vmax.f32 %v516_v58, 0.0  ;;  %v4158_v58 = vld [vmem:[%s4967_s5 + $0x90] sm:$0xff]  }
  0x77   : > { %1348 = vmatpush1.bf16.msra.mxu0 %v4031_v59  ;;  %1434 = vmatpush1.bf16.msra.mxu1 %v4032_v61  ;;  %v520_v59 = vadd.f32 %v508_v48, %v491_v54  ;;  %v4098_v61 = vld [vmem:[#allocation2 + $0x2ec] ss:$16 sps:$4 sm:$0xff]   ;;  %v4155_v54 = vld [vmem:[%s4967_s5 + $0x50] sm:$0xff]  }
  0x78   : > { %1349 = vmatprep.subr.bf16.mxu0 %v4033_v0  ;;  %1435 = vmatprep.subr.bf16.mxu1 %v4035_v1  ;;  %v4096_v1 = vld [vmem:[#allocation2 + $0x2e8] ss:$16 sps:$4 sm:$0xff]  }
  0x79   : > { %v528_v0 = vmax.f32 %v520_v59, 0.0  ;;  %v4159_v59 = vld [vmem:[%s4967_s5 + $0x58] sm:$0xff]  }
  0x7b   : > { %1350 = vmatpush1.bf16.msra.mxu0 %v4037_v2  ;;  %1436 = vmatpush1.bf16.msra.mxu1 %v4038_v4  ;;  %v4101_v2 = vld [vmem:[#allocation2 + $0x304] ss:$16 sps:$4 sm:$0xff]   ;;  %v532_v3 = vpack.c.bf16 %v528_v0, %v524_v63  ;;  %v4104_v4 = vld [vmem:[#allocation2 + $0x30c] ss:$16 sps:$4 sm:$0xff]  }
  0x7c   : > { %1351 = vmatprep.subr.bf16.mxu0 %v4039_v8  ;;  %1437 = vmatprep.subr.bf16.mxu1 %v4041_v9  ;;  %v4110_v8 = vld [vmem:[#allocation2 + $0x32c] ss:$16 sps:$4 sm:$0xff]   ;;  %v4105_v9 = vld [vmem:[#allocation2 + $0x320] ss:$16 sps:$4 sm:$0xff]  }
  0x7d   : > { %v4162_v63 = vld [vmem:[%s4967_s5 + $0x98] sm:$0xff]   ;;  %v4163_v0 = vld [vmem:[%s4967_s5 + $0x60] sm:$0xff]  }
  0x7f   : > { %1352 = vmatpush1.bf16.msra.mxu0 %v4043_v12  ;;  %1438 = vmatpush1.bf16.msra.mxu1 %v4044_v13  ;;  %v4116_v12 = vld [vmem:[#allocation2 + $0x34c] ss:$16 sps:$4 sm:$0xff]   ;;  %v4111_v13 = vld [vmem:[#allocation2 + $0x340] ss:$16 sps:$4 sm:$0xff]  }
  0x80   : > { %1353 = vmatprep.subr.bf16.mxu0 %v4045_v14  ;;  %1439 = vmatprep.subr.bf16.mxu1 %v4047_v15  ;;  %v4114_v14 = vld [vmem:[#allocation2 + $0x348] ss:$16 sps:$4 sm:$0xff]   ;;  %v4119_v15 = vld [vmem:[#allocation2 + $0x364] ss:$16 sps:$4 sm:$0xff]  }
  0x83   : > { %1354 = vmatpush1.bf16.msra.mxu0 %v4049_v18  ;;  %1440 = vmatpush1.bf16.msra.mxu1 %v4050_v19  ;;  %v4120_v18 = vld [vmem:[#allocation2 + $0x368] ss:$16 sps:$4 sm:$0xff]   ;;  %v4125_v19 = vld [vmem:[#allocation2 + $0x384] ss:$16 sps:$4 sm:$0xff]  }
  0x84   : > { %1366 = vmatprep.subr.bf16.mxu0 %v4053_v20  ;;  %1452 = vmatprep.subr.bf16.mxu1 %v4056_v21  ;;  %v4128_v20 = vld [vmem:[#allocation2 + $0x38c] ss:$16 sps:$4 sm:$0xff]   ;;  %v4123_v21 = vld [vmem:[#allocation2 + $0x380] ss:$16 sps:$4 sm:$0xff]  }
  0x86   : > { %1356 = vmatmul.mubr.bf16.vlgmr.msra.gmra.mrb[0].mxu0 %v529_v22  ;;  %1442 = vmatmul.mubr.bf16.vlgmr.msra.gmra.mrb[0].mxu1 %v529_v22  ;;  %v4126_v22 = vld [vmem:[#allocation2 + $0x388] ss:$16 sps:$4 sm:$0xff]  }
  0x87   : > { %1367 = vmatpush1.bf16.msra.mxu0 %v4051_v23  ;;  %1453 = vmatpush1.bf16.msra.mxu1 %v4054_v24  ;;  %v4131_v23 = vld [vmem:[#allocation2 + $0x3a4] ss:$16 sps:$4 sm:$0xff]   ;;  %v4134_v24 = vld [vmem:[#allocation2 + $0x3ac] ss:$16 sps:$4 sm:$0xff]  }
  0x88   : > { %1368 = vmatprep.subr.bf16.mxu0 %v4059_v25  ;;  %1454 = vmatprep.subr.bf16.mxu1 %v4062_v26  ;;  %v4129_v25 = vld [vmem:[#allocation2 + $0x3a0] ss:$16 sps:$4 sm:$0xff]   ;;  %v4132_v26 = vld [vmem:[#allocation2 + $0x3a8] ss:$16 sps:$4 sm:$0xff]  }
  0x89   : > { %1398 = vmatprep.mubr.bf16.mxu0 %v532_v3  ;;  %1484 = vmatprep.mubr.bf16.mxu1 %v532_v3  ;;  %v4166_v3 = vld [vmem:[%s4967_s5 + $0xa0] sm:$0xff]  }
  0x8b   : > { %1369 = vmatpush1.bf16.msra.mxu0 %v4057_v27  ;;  %1455 = vmatpush1.bf16.msra.mxu1 %v4060_v28  ;;  %v486_v27 = vld [vmem:[%s4962_s0 + $0x10] sm:$0xff] }
  0x8c   : > { %1370 = vmatprep.subr.bf16.mxu0 %v4065_v29  ;;  %1456 = vmatprep.subr.bf16.mxu1 %v4068_v30  ;;  %v490_v28 = vld [vmem:[%s4962_s0 + $0x30] sm:$0xff]  ;;  %v4140_v30 = vld [vmem:[#allocation2 + $0x3cc] ss:$16 sps:$4 sm:$0xff]  }
  0x8d   : > { %v4137_v29 = vld [vmem:[#allocation2 + $0x3c4] ss:$16 sps:$4 sm:$0xff]  }
  0x8f   : > { %1371 = vmatpush1.bf16.msra.mxu0 %v4063_v31  ;;  %1457 = vmatpush1.bf16.msra.mxu1 %v4066_v32  ;;  %v504_v31 = vrot.slane %v4676_v51, %v4706_v55  ;;  %v4135_v32 = vld [vmem:[#allocation2 + $0x3c0] ss:$16 sps:$4 sm:$0xff]  }
  0x90   : > { %1372 = vmatprep.subr.bf16.mxu0 %v4071_v33  ;;  %1458 = vmatprep.subr.bf16.mxu1 %v4074_v34  ;;  %v4138_v33 = vld [vmem:[#allocation2 + $0x3c8] ss:$16 sps:$4 sm:$0xff]   ;;  %v4143_v34 = vld [vmem:[#allocation2 + $0x3e4] ss:$16 sps:$4 sm:$0xff]  }
  0x91   : > { %v4147_v51 = vld [vmem:[%s4967_s5 + $0x40] sm:$0xff]  }
  0x93   : > { %1373 = vmatpush1.bf16.msra.mxu0 %v4069_v35  ;;  %1459 = vmatpush1.bf16.msra.mxu1 %v4072_v36  ;;  %v4146_v35 = vld [vmem:[#allocation2 + $0x3ec] ss:$16 sps:$4 sm:$0xff]   ;;  %v515_v36 = vadd.f32 %v504_v31, %v486_v27 }
  0x94   : > { %1374 = vmatprep.subr.bf16.mxu0 %v4077_v37  ;;  %1460 = vmatprep.subr.bf16.mxu1 %v4080_v38  ;;  %v519_v37 = vadd.f32 %v504_v31, %v490_v28  ;;  %v4141_v38 = vld [vmem:[#allocation2 + $0x3e0] ss:$16 sps:$4 sm:$0xff]  }
  0x97   : > { %1375 = vmatpush1.bf16.msra.mxu0 %v4075_v39  ;;  %1461 = vmatpush1.bf16.msra.mxu1 %v4078_v40  ;;  %v4144_v39 = vld [vmem:[#allocation2 + $0x3e8] ss:$16 sps:$4 sm:$0xff]   ;;  %v523_v40 = vmax.f32 %v515_v36, 0.0 }
  0x98   : > { %1376 = vmatprep.subr.bf16.mxu0 %v4083_v43  ;;  %1462 = vmatprep.subr.bf16.mxu1 %v4086_v44  ;;  %v527_v43 = vmax.f32 %v519_v37, 0.0  ;;  %v4148_v44 = vld [vmem:[%s4967_s5 + $0xc0] sm:$0xff]  }
  0x9a   : > { %v531_v48 = vpack.c.bf16 %v527_v43, %v523_v40 }
  0x9b   : > { %1377 = vmatpush1.bf16.msra.mxu0 %v4081_v45  ;;  %1463 = vmatpush1.bf16.msra.mxu1 %v4084_v46  ;;  %v4149_v45 = vld [vmem:[%s4967_s5] sm:$0xff]  }
  0x9c   : > { %1378 = vmatprep.subr.bf16.mxu0 %v4089_v49  ;;  %1464 = vmatprep.subr.bf16.mxu1 %v4092_v50  ;;  %v4150_v46 = vld [vmem:[%s4967_s5 + $0x80] sm:$0xff]   ;;  %v4151_v49 = vld [vmem:[%s4967_s5 + $0x48] sm:$0xff]  }
  0x9d   : > { %v4152_v50 = vld [vmem:[%s4967_s5 + $0xc8] sm:$0xff]  }
  0x9f   : > { %1379 = vmatpush1.bf16.msra.mxu0 %v4087_v52  ;;  %1465 = vmatpush1.bf16.msra.mxu1 %v4090_v56  ;;  %v4153_v52 = vld [vmem:[%s4967_s5 + $0x8] sm:$0xff]   ;;  %v4156_v56 = vld [vmem:[%s4967_s5 + $0xd0] sm:$0xff]  }
  0xa0   : > { %1380 = vmatprep.subr.bf16.mxu0 %v4095_v57  ;;  %1466 = vmatprep.subr.bf16.mxu1 %v4098_v61  ;;  %v4157_v57 = vld [vmem:[%s4967_s5 + $0x10] sm:$0xff]   ;;  %v4160_v61 = vld [vmem:[%s4967_s5 + $0xd8] sm:$0xff]  }
  0xa3   : > { %1381 = vmatpush1.bf16.msra.mxu0 %v4093_v62  ;;  %1467 = vmatpush1.bf16.msra.mxu1 %v4096_v1  ;;  %v4161_v62 = vld [vmem:[%s4967_s5 + $0x18] sm:$0xff]   ;;  %v4164_v1 = vld [vmem:[%s4967_s5 + $0xe0] sm:$0xff]  }
  0xa4   : > { %1382 = vmatprep.subr.bf16.mxu0 %v4101_v2  ;;  %1468 = vmatprep.subr.bf16.mxu1 %v4104_v4  ;;  %v4165_v2 = vld [vmem:[%s4967_s5 + $0x20] sm:$0xff]   ;;  %v4167_v4 = vld [vmem:[%s4967_s5 + $0x68] sm:$0xff]  }
  0xa7   : > { %1383 = vmatpush1.bf16.msra.mxu0 %v4099_v5  ;;  %1469 = vmatpush1.bf16.msra.mxu1 %v4102_v6  ;;  %v4168_v5 = vld [vmem:[%s4967_s5 + $0xe8] sm:$0xff]  }
  0xa8   : > { %1384 = vmatprep.subr.bf16.mxu0 %v4107_v7  ;;  %1470 = vmatprep.subr.bf16.mxu1 %v4110_v8  ;;  %v4169_v6 = vld [vmem:[%s4967_s5 + $0x28] sm:$0xff]   ;;  %v4171_v8 = vld [vmem:[%s4967_s5 + $0x70] sm:$0xff]  }
  0xa9   : > { %v4170_v7 = vld [vmem:[%s4967_s5 + $0xa8] sm:$0xff]  }
  0xab   : > { %1385 = vmatpush1.bf16.msra.mxu0 %v4105_v9  ;;  %1471 = vmatpush1.bf16.msra.mxu1 %v4108_v10  ;;  %v4172_v9 = vld [vmem:[%s4967_s5 + $0xf0] sm:$0xff]  }
  0xac   : > { %1386 = vmatprep.subr.bf16.mxu0 %v4113_v11  ;;  %1472 = vmatprep.subr.bf16.mxu1 %v4116_v12  ;;  %v4173_v10 = vld [vmem:[%s4967_s5 + $0x30] sm:$0xff]   ;;  %v4175_v12 = vld [vmem:[%s4967_s5 + $0x78] sm:$0xff]  }
  0xad   : > { %v4174_v11 = vld [vmem:[%s4967_s5 + $0xb0] sm:$0xff]  }
  0xaf   : > { %1387 = vmatpush1.bf16.msra.mxu0 %v4111_v13  ;;  %1473 = vmatpush1.bf16.msra.mxu1 %v4114_v14  ;;  %v4176_v13 = vld [vmem:[%s4967_s5 + $0xf8] sm:$0xff]  }
  0xb0   : > { %1388 = vmatprep.subr.bf16.mxu0 %v4119_v15  ;;  %1474 = vmatprep.subr.bf16.mxu1 %v4122_v16  ;;  %v4177_v14 = vld [vmem:[%s4967_s5 + $0x38] sm:$0xff]   ;;  %v661_v16 = vld [vmem:[%s4966_s4] sm:$0xf] }
  0xb1   : > { %v4178_v15 = vld [vmem:[%s4967_s5 + $0xb8] sm:$0xff]  }
  0xb3   : > { %1389 = vmatpush1.bf16.msra.mxu0 %v4117_v17  ;;  %1475 = vmatpush1.bf16.msra.mxu1 %v4120_v18  ;;  %v666_v17 = vrot.slane %v661_v16, %v4684_v60  ;;  %v674_v18 = vrot.slane %v661_v16, %v4706_v55 }
  0xb4   : > { %1390 = vmatprep.subr.bf16.mxu0 %v4125_v19  ;;  %1476 = vmatprep.subr.bf16.mxu1 %v4128_v20  ;;  %v670_v19 = vrot.slane %v661_v16, %v4671_v47  ;;  %v678_v20 = vrot.slane %v661_v16, %v4695_v41 }
  0xb7   : > { %1391 = vmatpush1.bf16.msra.mxu0 %v4123_v21  ;;  %1477 = vmatpush1.bf16.msra.mxu1 %v4126_v22 }
  0xb8   : > { %1392 = vmatprep.subr.bf16.mxu0 %v4131_v23  ;;  %1478 = vmatprep.subr.bf16.mxu1 %v4134_v24 }
  0xbb   : > { %1393 = vmatpush1.bf16.msra.mxu0 %v4129_v25  ;;  %1479 = vmatpush1.bf16.msra.mxu1 %v4132_v26 }
  0xbc   : > { %1394 = vmatprep.subr.bf16.mxu0 %v4137_v29  ;;  %1480 = vmatprep.subr.bf16.mxu1 %v4140_v30 }
  0xbf   : > { %1395 = vmatpush1.bf16.msra.mxu0 %v4135_v32  ;;  %1481 = vmatpush1.bf16.msra.mxu1 %v4138_v33 }
  0xc0   : > { %1396 = vmatprep.subr.bf16.mxu0 %v4143_v34  ;;  %1482 = vmatprep.subr.bf16.mxu1 %v4146_v35 }
  0xc3   : > { %1397 = vmatpush1.bf16.msra.mxu0 %v4141_v38  ;;  %1483 = vmatpush1.bf16.msra.mxu1 %v4144_v39 }
  0xc4   : > { %3785 = vmatprep.subr.bf16.mxu0 %v4147_v51  ;;  %3807 = vmatprep.subr.bf16.mxu1 %v4148_v44 }
  0xc6   : > { %1399 = vmatmul.mubr.bf16.vlgmr.msra.gmra.mrb[0].mxu0 %v531_v48  ;;  %1485 = vmatmul.mubr.bf16.vlgmr.msra.gmra.mrb[0].mxu1 %v531_v48 }
  0xc7   : > { %3786 = vmatpush3.bf16.msra.mxu0 %v4149_v45  ;;  %3808 = vmatpush3.bf16.msra.mxu1 %v4150_v46 }
  0xc8   : > { %3787 = vmatprep.subr.bf16.mxu0 %v4151_v49  ;;  %3809 = vmatprep.subr.bf16.mxu1 %v4152_v50 }
  0xcb   : > { %3788 = vmatpush3.bf16.msra.mxu0 %v4153_v52  ;;  %3810 = vmatpush3.bf16.msra.mxu1 %v4154_v53  ;;  %v4496_v52 = vmov 1983009808  }
  0xcc   : > { %3789 = vmatprep.subr.bf16.mxu0 %v4155_v54  ;;  %3811 = vmatprep.subr.bf16.mxu1 %v4156_v56  ;;  %v1878_v53 = vunpack.c.l.s4 %v4496_v52  ;;  %v1853_v56 = vld [vmem:[%s4969_s7] sm:$0xff] }
  0xcd   : > { %v4218_v52 = vld [vmem:[#allocation4 + $0xc4] ss:$16 sps:$4 sm:$0xff]  }
  0xce   : > { %v1879_v54 = vunpack.c.0.s8 %v1878_v53  ;;  %v4221_v53 = vld [vmem:[#allocation4 + $0xcc] ss:$16 sps:$4 sm:$0xff]  }
  0xcf   : > { %3790 = vmatpush3.bf16.msra.mxu0 %v4157_v57  ;;  %3812 = vmatpush3.bf16.msra.mxu1 %v4158_v58  ;;  %v1876_v58 = vcombine.high %v1853_v56, %v1853_v56 }
  0xd0   : > { %3791 = vmatprep.subr.bf16.mxu0 %v4159_v59  ;;  %3813 = vmatprep.subr.bf16.mxu1 %v4160_v61  ;;  %v1882_v57 = vsub.s32 %v1879_v54, %v4662_v42  ;;  %v4182_v42 = vld [vmem:[#allocation4 + $0x4] ss:$16 sps:$4 sm:$0xff]   ;;  %v4216_v54 = vld [vmem:[#allocation4 + $0xc0] ss:$16 sps:$4 sm:$0xff]  }
  0xd2   : > { %v1883_v59 = vrot.slane %v1853_v56, %v1882_v57  ;;  %v1890_v61 = vrot.slane %v1876_v58, %v1882_v57  ;;  %v4219_v56 = vld [vmem:[#allocation4 + $0xc8] ss:$16 sps:$4 sm:$0xff]   ;;  %v4224_v57 = vld [vmem:[#allocation4 + $0xe4] ss:$16 sps:$4 sm:$0xff]   ;;  %v4227_v58 = vld [vmem:[#allocation4 + $0xec] ss:$16 sps:$4 sm:$0xff]  }
  0xd3   : > { %3792 = vmatpush3.bf16.msra.mxu0 %v4161_v62  ;;  %3814 = vmatpush3.bf16.msra.mxu1 %v4162_v63  ;;  %v4497_v63 = vmov 65535  }
  0xd4   : > { %3793 = vmatprep.subr.bf16.mxu0 %v4163_v0  ;;  %3815 = vmatprep.subr.bf16.mxu1 %v4164_v1  ;;  %v1891_v62 = vcombine.high %v1883_v59, %v1883_v59  ;;  %v1899_v0 = vsel %vm1897_vm0, 4294967295, %v4497_v63  ;;  %v1892_v1 = vcombine.high %v1890_v61, %v1890_v61  ;;  %v4233_v63 = vld [vmem:[#allocation4 + $0x10c] ss:$16 sps:$4 sm:$0xff]  }
  0xd7   : > { %3794 = vmatpush3.bf16.msra.mxu0 %v4165_v2  ;;  %3816 = vmatpush3.bf16.msra.mxu1 %v4166_v3  ;;  %v1900_v2 = vsel %vm1898_vm1, %v1899_v0, 0  ;;  %v4228_v0 = vld [vmem:[#allocation4 + $0x100] ss:$16 sps:$4 sm:$0xff]  }
  0xd8   : > { %3795 = vmatprep.subr.bf16.mxu0 %v4167_v4  ;;  %3817 = vmatprep.subr.bf16.mxu1 %v4168_v5  ;;  %v1905_v3 = vand.u32 %v1900_v2, %v1891_v62  ;;  %v1911_v4 = vand.u32 %v1900_v2, %v1892_v1  ;;  %v1902_v5 = vand.u32 %v1900_v2, %v1883_v59  ;;  %v4222_v59 = vld [vmem:[#allocation4 + $0xe0] ss:$16 sps:$4 sm:$0xff]   ;;  %v4230_v62 = vld [vmem:[#allocation4 + $0x104] ss:$16 sps:$4 sm:$0xff]   ;;  %v4231_v1 = vld [vmem:[#allocation4 + $0x108] ss:$16 sps:$4 sm:$0xff]  }
  0xdb   : > { %3796 = vmatpush3.bf16.msra.mxu0 %v4169_v6  ;;  %3818 = vmatpush3.bf16.msra.mxu1 %v4170_v7  ;;  %v1908_v6 = vand.u32 %v1900_v2, %v1890_v61  ;;  %v4498_v7 = vmov 0   ;;  %v4225_v61 = vld [vmem:[#allocation4 + $0xe8] ss:$16 sps:$4 sm:$0xff]   ;;  %v4236_v2 = vld [vmem:[#allocation4 + $0x124] ss:$16 sps:$4 sm:$0xff]  }
  0xdc   : > { %3797 = vmatprep.subr.bf16.mxu0 %v4171_v8  ;;  %3819 = vmatprep.subr.bf16.mxu1 %v4172_v9  ;;  %v4185_v8 = vld [vmem:[#allocation4 + $0xc] ss:$16 sps:$4 sm:$0xff]  }
  0xdf   : > { %3798 = vmatpush3.bf16.msra.mxu0 %v4173_v10  ;;  %3820 = vmatpush3.bf16.msra.mxu1 %v4174_v11  ;;  %v3585_v11 = vld [vmem:[%s4968_s6] ss:$0 sm:$0xff] }
  0xe0   : > { %3799 = vmatprep.subr.bf16.mxu0 %v4175_v12  ;;  %3821 = vmatprep.subr.bf16.mxu1 %v4176_v13 }
  0xe3   : > { %3800 = vmatpush3.bf16.msra.mxu0 %v4177_v14  ;;  %3822 = vmatpush3.bf16.msra.mxu1 %v4178_v15 }
  0xe4   : > { %1913 = vmatprep.subr.bf16.mxu0 %v1905_v3  ;;  %1956 = vmatprep.subr.bf16.mxu1 %v1911_v4  ;;  %v4239_v3 = vld [vmem:[#allocation4 + $0x12c] ss:$16 sps:$4 sm:$0xff]   ;;  %v4234_v4 = vld [vmem:[#allocation4 + $0x120] ss:$16 sps:$4 sm:$0xff]  }
 0x199   : > { %v1400_v21 = vpop.f32.mrb[0].mxu0  ;;  %v1486_v22 = vpop.f32.mrb[0].mxu1 }
 0x19a   : > { %v3873_v23 = vadd.f32 %v1400_v21, %v666_v17  ;;  %v3877_v24 = vadd.f32 %v1486_v22, %v674_v18  ;;  %v1402_v25 = vpop.f32.mrb[1].mxu0  ;;  %v1488_v26 = vpop.f32.mrb[1].mxu1 }
 0x19b   : > { %v3874_v27 = vadd.f32 %v1402_v25, %v670_v19  ;;  %v3878_v28 = vadd.f32 %v1488_v26, %v678_v20  ;;  %v1404_v29 = vpop.f32.mrb[2].mxu0  ;;  %v1490_v30 = vpop.f32.mrb[2].mxu1  ;;  %v4180_v26 = vld [vmem:[#allocation4] ss:$16 sps:$4 sm:$0xff]  }
 0x19c   : > { %v3875_v31 = vadd.f32 %v1404_v29, %v666_v17  ;;  %v3879_v32 = vadd.f32 %v1490_v30, %v674_v18  ;;  %v1406_v33 = vpop.f32.mrb[3].mxu0  ;;  %v1492_v34 = vpop.f32.mrb[3].mxu1  ;;  %v1495_v37 = vmax.f32 %v3873_v23, 0.0  ;;  %v1497_v38 = vmax.f32 %v3877_v24, 0.0  ;;  %v4188_v29 = vld [vmem:[#allocation4 + $0x24] ss:$16 sps:$4 sm:$0xff]  }
 0x19d   : > { %v3876_v35 = vadd.f32 %v1406_v33, %v670_v19  ;;  %v3880_v36 = vadd.f32 %v1492_v34, %v678_v20  ;;  %v1496_v43 = vmax.f32 %v3874_v27, 0.0  ;;  %v1498_v51 = vmax.f32 %v3878_v28, 0.0  ;;  %v4183_v27 = vld [vmem:[#allocation4 + $0x8] ss:$16 sps:$4 sm:$0xff]   ;;  %v4191_v30 = vld [vmem:[#allocation4 + $0x2c] ss:$16 sps:$4 sm:$0xff]  }
 0x19e   : > { %v1499_v39 = vmax.f32 %v3875_v31, 0.0  ;;  %v1501_v40 = vmax.f32 %v3879_v32, 0.0  ;;  %v4186_v31 = vld [vmem:[#allocation4 + $0x20] ss:$16 sps:$4 sm:$0xff]   ;;  %v4189_v32 = vld [vmem:[#allocation4 + $0x28] ss:$16 sps:$4 sm:$0xff]  }
 0x19f   : > { %v1500_v44 = vmax.f32 %v3876_v35, 0.0  ;;  %v1502_v45 = vmax.f32 %v3880_v36, 0.0  ;;  %v4194_v33 = vld [vmem:[#allocation4 + $0x44] ss:$16 sps:$4 sm:$0xff]   ;;  %v4197_v34 = vld [vmem:[#allocation4 + $0x4c] ss:$16 sps:$4 sm:$0xff]  }
 0x1a0   : > { %v1503_v46 = vpack.c.bf16 %v1499_v39, %v1495_v37  ;;  %v1505_v48 = vpack.c.bf16 %v1501_v40, %v1497_v38  ;;  %v4192_v35 = vld [vmem:[#allocation4 + $0x40] ss:$16 sps:$4 sm:$0xff]   ;;  %v4195_v36 = vld [vmem:[#allocation4 + $0x48] ss:$16 sps:$4 sm:$0xff]   ;;  %v4200_v37 = vld [vmem:[#allocation4 + $0x64] ss:$16 sps:$4 sm:$0xff]  }
 0x1a1   : > { %v1504_v49 = vpack.c.bf16 %v1500_v44, %v1496_v43  ;;  %v1506_v50 = vpack.c.bf16 %v1502_v45, %v1498_v51  ;;  %v4203_v38 = vld [vmem:[#allocation4 + $0x6c] ss:$16 sps:$4 sm:$0xff]   ;;  %v4198_v39 = vld [vmem:[#allocation4 + $0x60] ss:$16 sps:$4 sm:$0xff]   ;;  %v4201_v40 = vld [vmem:[#allocation4 + $0x68] ss:$16 sps:$4 sm:$0xff]  }
 0x1a2   : > { %v4206_v43 = vld [vmem:[#allocation4 + $0x84] ss:$16 sps:$4 sm:$0xff]   ;;  %v4209_v51 = vld [vmem:[#allocation4 + $0x8c] ss:$16 sps:$4 sm:$0xff]   ;;  %v4204_v44 = vld [vmem:[#allocation4 + $0x80] ss:$16 sps:$4 sm:$0xff]  }
 0x1a3   : > { %1802 = vmatprep.mubr.bf16.mxu0 %v1504_v49  ;;  %1843 = vmatprep.mubr.bf16.mxu1 %v1506_v50  ;;  %v4207_v45 = vld [vmem:[#allocation4 + $0x88] ss:$16 sps:$4 sm:$0xff]   ;;  %v4210_v49 = vld [vmem:[#allocation4 + $0xa0] ss:$16 sps:$4 sm:$0xff]  }
 0x1a4   : > { %1803 = vmatmul.mubr.bf16.vlgmr.msra.gmra.mrb[4].mxu0 %v1503_v46  ;;  %1844 = vmatmul.mubr.bf16.vlgmr.msra.gmra.mrb[4].mxu1 %v1505_v48  ;;  %v4212_v46 = vld [vmem:[#allocation4 + $0xa4] ss:$16 sps:$4 sm:$0xff]   ;;  %v4215_v48 = vld [vmem:[#allocation4 + $0xac] ss:$16 sps:$4 sm:$0xff]   ;;  %v4213_v50 = vld [vmem:[#allocation4 + $0xa8] ss:$16 sps:$4 sm:$0xff]  }
 0x1a5   : > { %1914 = vmatpush1.bf16.msra.mxu0 %v1902_v5  ;;  %1957 = vmatpush1.bf16.msra.mxu1 %v1908_v6  ;;  %v4237_v5 = vld [vmem:[#allocation4 + $0x128] ss:$16 sps:$4 sm:$0xff]   ;;  %v4242_v6 = vld [vmem:[#allocation4 + $0x144] ss:$16 sps:$4 sm:$0xff]  }
 0x1a6   : > { %1945 = vmatprep.mubr.bf16.mxu0 %v4498_v7  ;;  %1988 = vmatprep.mubr.bf16.mxu1 %v4498_v7  ;;  %v4245_v7 = vld [vmem:[#allocation4 + $0x14c] ss:$16 sps:$4 sm:$0xff]  }
 0x1a7   : > { %2801 = vmatprep.subr.bf16.mxu0 %v4182_v42  ;;  %2887 = vmatprep.subr.bf16.mxu1 %v4185_v8  ;;  %v4240_v42 = vld [vmem:[#allocation4 + $0x140] ss:$16 sps:$4 sm:$0xff]   ;;  %v4243_v8 = vld [vmem:[#allocation4 + $0x148] ss:$16 sps:$4 sm:$0xff]  }
 0x277   : > { %v3801_v9 = vpop.f32.mrb[4].mxu0  ;;  %v3823_v10 = vpop.f32.mrb[4].mxu1 }
 0x278   : > { %v3802_v12 = vpop.f32.mrb[5].mxu0  ;;  %v3824_v13 = vpop.f32.mrb[5].mxu1 }
 0x279   : > { %v3803_v14 = vadd.f32 %v3802_v12, %v3801_v9  ;;  %v3825_v15 = vadd.f32 %v3824_v13, %v3823_v10  ;;  %v3804_v16 = vpop.f32.mrb[6].mxu0  ;;  %v3826_v17 = vpop.f32.mrb[6].mxu1  ;;  %v4248_v9 = vld [vmem:[#allocation4 + $0x164] ss:$16 sps:$4 sm:$0xff]   ;;  %v4251_v10 = vld [vmem:[#allocation4 + $0x16c] ss:$16 sps:$4 sm:$0xff]  }
 0x27a   : > { %v3805_v18 = vpop.f32.mrb[7].mxu0  ;;  %v3827_v19 = vpop.f32.mrb[7].mxu1  ;;  %v4249_v12 = vld [vmem:[#allocation4 + $0x168] ss:$16 sps:$4 sm:$0xff]   ;;  %v4254_v13 = vld [vmem:[#allocation4 + $0x184] ss:$16 sps:$4 sm:$0xff]  }
 0x27b   : > { %v1805_v20 = vadd.f32 %v3803_v14, %v3585_v11  ;;  %v3806_v21 = vadd.f32 %v3805_v18, %v3804_v16  ;;  %v3828_v22 = vadd.f32 %v3827_v19, %v3826_v17  ;;  %v4257_v14 = vld [vmem:[#allocation4 + $0x18c] ss:$16 sps:$4 sm:$0xff]   ;;  %v4255_v16 = vld [vmem:[#allocation4 + $0x188] ss:$16 sps:$4 sm:$0xff]   ;;  %v4260_v17 = vld [vmem:[#allocation4 + $0x1a4] ss:$16 sps:$4 sm:$0xff]  }
 0x27c   : > { %v4263_v18 = vld [vmem:[#allocation4 + $0x1ac] ss:$16 sps:$4 sm:$0xff]   ;;  %v4258_v19 = vld [vmem:[#allocation4 + $0x1a0] ss:$16 sps:$4 sm:$0xff]  }
 0x27d   : > { %v1846_v23 = vadd.f32 %v3825_v15, %v1805_v20  ;;  %v1808_v24 = vadd.f32 %v3806_v21, %v3585_v11  ;;  %v4246_v11 = vld [vmem:[#allocation4 + $0x160] ss:$16 sps:$4 sm:$0xff]   ;;  %v4261_v20 = vld [vmem:[#allocation4 + $0x1a8] ss:$16 sps:$4 sm:$0xff]   ;;  %v4266_v21 = vld [vmem:[#allocation4 + $0x1c4] ss:$16 sps:$4 sm:$0xff]  }
 0x27e   : > { %v4252_v15 = vld [vmem:[#allocation4 + $0x180] ss:$16 sps:$4 sm:$0xff]  }
 0x27f   : > { %v1849_v25 = vadd.f32 %v3828_v22, %v1808_v24  ;;  %v4269_v22 = vld [vmem:[#allocation4 + $0x1cc] ss:$16 sps:$4 sm:$0xff]   ;;  %v4267_v24 = vld [vmem:[#allocation4 + $0x1c8] ss:$16 sps:$4 sm:$0xff]  }
 0x281   : > { %v1852_v28 = vpack.c.bf16 %v1849_v25, %v1846_v23  ;;  %v4264_v23 = vld [vmem:[#allocation4 + $0x1c0] ss:$16 sps:$4 sm:$0xff]   ;;  %v4272_v25 = vld [vmem:[#allocation4 + $0x1e4] ss:$16 sps:$4 sm:$0xff]  }
 0x283   : > { %3618 = vmatmul.mubr.msk.bf16.vlgmr.msra.gmra.mrb[8].mxu0 %vm1893_vm2, %v1852_v28  ;;  %3619 = vmatmul.mubr.msk.bf16.vlgmr.msra.gmra.mrb[8].mxu1 %vm1893_vm2, %v1852_v28  ;;  %v4273_v28 = vld [vmem:[#allocation4 + $0x1e8] ss:$16 sps:$4 sm:$0xff]  }
 0x284   : > { %2802 = vmatpush1.bf16.msra.mxu0 %v4180_v26  ;;  %2888 = vmatpush1.bf16.msra.mxu1 %v4183_v27  ;;  %v4275_v26 = vld [vmem:[#allocation4 + $0x1ec] ss:$16 sps:$4 sm:$0xff]   ;;  %v4270_v27 = vld [vmem:[#allocation4 + $0x1e0] ss:$16 sps:$4 sm:$0xff]  }
 0x285   : > { %2803 = vmatprep.subr.bf16.mxu0 %v4188_v29  ;;  %2889 = vmatprep.subr.bf16.mxu1 %v4191_v30  ;;  %v4278_v29 = vld [vmem:[#allocation4 + $0x204] ss:$16 sps:$4 sm:$0xff]   ;;  %v4281_v30 = vld [vmem:[#allocation4 + $0x20c] ss:$16 sps:$4 sm:$0xff]  }
 0x288   : > { %2804 = vmatpush1.bf16.msra.mxu0 %v4186_v31  ;;  %2890 = vmatpush1.bf16.msra.mxu1 %v4189_v32  ;;  %v483_v31 = vld [vmem:[%s482_s15] ss:$2 sm:$0xf] }
 0x289   : > { %2805 = vmatprep.subr.bf16.mxu0 %v4194_v33  ;;  %2891 = vmatprep.subr.bf16.mxu1 %v4197_v34  ;;  %v1858_v32 = vrot.slane %v483_v31, %v4684_v60  ;;  %v1866_v33 = vrot.slane %v483_v31, %v4706_v55  ;;  %v1862_v34 = vrot.slane %v483_v31, %v4671_v47 }
 0x28c   : > { %2806 = vmatpush1.bf16.msra.mxu0 %v4192_v35  ;;  %2892 = vmatpush1.bf16.msra.mxu1 %v4195_v36  ;;  %v1870_v35 = vrot.slane %v483_v31, %v4695_v41  ;;  %v4323_v31 = vld [vmem:[#allocation4 + $0x2ec] ss:$16 sps:$4 sm:$0xff]  }
 0x28d   : > { %2807 = vmatprep.subr.bf16.mxu0 %v4200_v37  ;;  %2893 = vmatprep.subr.bf16.mxu1 %v4203_v38 }
 0x290   : > { %2808 = vmatpush1.bf16.msra.mxu0 %v4198_v39  ;;  %2894 = vmatpush1.bf16.msra.mxu1 %v4201_v40 }
 0x291   : > { %2809 = vmatprep.subr.bf16.mxu0 %v4206_v43  ;;  %2895 = vmatprep.subr.bf16.mxu1 %v4209_v51 }
 0x294   : > { %2810 = vmatpush1.bf16.msra.mxu0 %v4204_v44  ;;  %2896 = vmatpush1.bf16.msra.mxu1 %v4207_v45 }
 0x295   : > { %2811 = vmatprep.subr.bf16.mxu0 %v4212_v46  ;;  %2897 = vmatprep.subr.bf16.mxu1 %v4215_v48 }
 0x298   : > { %2812 = vmatpush1.bf16.msra.mxu0 %v4210_v49  ;;  %2898 = vmatpush1.bf16.msra.mxu1 %v4213_v50 }
 0x299   : > { %2813 = vmatprep.subr.bf16.mxu0 %v4218_v52  ;;  %2899 = vmatprep.subr.bf16.mxu1 %v4221_v53 }
 0x29c   : > { %2814 = vmatpush1.bf16.msra.mxu0 %v4216_v54  ;;  %2900 = vmatpush1.bf16.msra.mxu1 %v4219_v56 }
 0x29d   : > { %2815 = vmatprep.subr.bf16.mxu0 %v4224_v57  ;;  %2901 = vmatprep.subr.bf16.mxu1 %v4227_v58 }
 0x2a0   : > { %2816 = vmatpush1.bf16.msra.mxu0 %v4222_v59  ;;  %2902 = vmatpush1.bf16.msra.mxu1 %v4225_v61 }
 0x2a1   : > { %2817 = vmatprep.subr.bf16.mxu0 %v4230_v62  ;;  %2903 = vmatprep.subr.bf16.mxu1 %v4233_v63 }
 0x2a4   : > { %2818 = vmatpush1.bf16.msra.mxu0 %v4228_v0  ;;  %2904 = vmatpush1.bf16.msra.mxu1 %v4231_v1 }
 0x2a5   : > { %2819 = vmatprep.subr.bf16.mxu0 %v4236_v2  ;;  %2905 = vmatprep.subr.bf16.mxu1 %v4239_v3 }
 0x2a8   : > { %2820 = vmatpush1.bf16.msra.mxu0 %v4234_v4  ;;  %2906 = vmatpush1.bf16.msra.mxu1 %v4237_v5  ;;  %v4276_v5 = vld [vmem:[#allocation4 + $0x200] ss:$16 sps:$4 sm:$0xff]  }
 0x2a9   : > { %2821 = vmatprep.subr.bf16.mxu0 %v4242_v6  ;;  %2907 = vmatprep.subr.bf16.mxu1 %v4245_v7  ;;  %v4279_v6 = vld [vmem:[#allocation4 + $0x208] ss:$16 sps:$4 sm:$0xff]   ;;  %v4284_v7 = vld [vmem:[#allocation4 + $0x224] ss:$16 sps:$4 sm:$0xff]  }
 0x2ac   : > { %2822 = vmatpush1.bf16.msra.mxu0 %v4240_v42  ;;  %2908 = vmatpush1.bf16.msra.mxu1 %v4243_v8  ;;  %v4287_v42 = vld [vmem:[#allocation4 + $0x22c] ss:$16 sps:$4 sm:$0xff]   ;;  %v4282_v8 = vld [vmem:[#allocation4 + $0x220] ss:$16 sps:$4 sm:$0xff]  }
 0x2ad   : > { %2823 = vmatprep.subr.bf16.mxu0 %v4248_v9  ;;  %2909 = vmatprep.subr.bf16.mxu1 %v4251_v10  ;;  %v4285_v9 = vld [vmem:[#allocation4 + $0x228] ss:$16 sps:$4 sm:$0xff]   ;;  %v4290_v10 = vld [vmem:[#allocation4 + $0x244] ss:$16 sps:$4 sm:$0xff]  }
 0x2b0   : > { %2824 = vmatpush1.bf16.msra.mxu0 %v4246_v11  ;;  %2910 = vmatpush1.bf16.msra.mxu1 %v4249_v12  ;;  %v4293_v11 = vld [vmem:[#allocation4 + $0x24c] ss:$16 sps:$4 sm:$0xff]   ;;  %v4288_v12 = vld [vmem:[#allocation4 + $0x240] ss:$16 sps:$4 sm:$0xff]  }
 0x2b1   : > { %2825 = vmatprep.subr.bf16.mxu0 %v4254_v13  ;;  %2911 = vmatprep.subr.bf16.mxu1 %v4257_v14  ;;  %v4291_v13 = vld [vmem:[#allocation4 + $0x248] ss:$16 sps:$4 sm:$0xff]   ;;  %v4296_v14 = vld [vmem:[#allocation4 + $0x264] ss:$16 sps:$4 sm:$0xff]  }
 0x2b4   : > { %2826 = vmatpush1.bf16.msra.mxu0 %v4252_v15  ;;  %2912 = vmatpush1.bf16.msra.mxu1 %v4255_v16  ;;  %v4299_v15 = vld [vmem:[#allocation4 + $0x26c] ss:$16 sps:$4 sm:$0xff]   ;;  %v4294_v16 = vld [vmem:[#allocation4 + $0x260] ss:$16 sps:$4 sm:$0xff]  }
 0x2b5   : > { %2827 = vmatprep.subr.bf16.mxu0 %v4260_v17  ;;  %2913 = vmatprep.subr.bf16.mxu1 %v4263_v18  ;;  %v4297_v17 = vld [vmem:[#allocation4 + $0x268] ss:$16 sps:$4 sm:$0xff]   ;;  %v4302_v18 = vld [vmem:[#allocation4 + $0x284] ss:$16 sps:$4 sm:$0xff]  }
 0x2b8   : > { %2828 = vmatpush1.bf16.msra.mxu0 %v4258_v19  ;;  %2914 = vmatpush1.bf16.msra.mxu1 %v4261_v20  ;;  %v4305_v19 = vld [vmem:[#allocation4 + $0x28c] ss:$16 sps:$4 sm:$0xff]   ;;  %v4300_v20 = vld [vmem:[#allocation4 + $0x280] ss:$16 sps:$4 sm:$0xff]  }
 0x2b9   : > { %2829 = vmatprep.subr.bf16.mxu0 %v4266_v21  ;;  %2915 = vmatprep.subr.bf16.mxu1 %v4269_v22  ;;  %v4303_v21 = vld [vmem:[#allocation4 + $0x288] ss:$16 sps:$4 sm:$0xff]   ;;  %v4308_v22 = vld [vmem:[#allocation4 + $0x2a4] ss:$16 sps:$4 sm:$0xff]  }
 0x2bc   : > { %2830 = vmatpush1.bf16.msra.mxu0 %v4264_v23  ;;  %2916 = vmatpush1.bf16.msra.mxu1 %v4267_v24  ;;  %v4311_v23 = vld [vmem:[#allocation4 + $0x2ac] ss:$16 sps:$4 sm:$0xff]   ;;  %v4306_v24 = vld [vmem:[#allocation4 + $0x2a0] ss:$16 sps:$4 sm:$0xff]  }
 0x2bd   : > { %2831 = vmatprep.subr.bf16.mxu0 %v4272_v25  ;;  %2917 = vmatprep.subr.bf16.mxu1 %v4275_v26  ;;  %v4309_v25 = vld [vmem:[#allocation4 + $0x2a8] ss:$16 sps:$4 sm:$0xff]   ;;  %v4314_v26 = vld [vmem:[#allocation4 + $0x2c4] ss:$16 sps:$4 sm:$0xff]  }
 0x2c0   : > { %2832 = vmatpush1.bf16.msra.mxu0 %v4270_v27  ;;  %2918 = vmatpush1.bf16.msra.mxu1 %v4273_v28  ;;  %v4317_v27 = vld [vmem:[#allocation4 + $0x2cc] ss:$16 sps:$4 sm:$0xff]   ;;  %v4312_v28 = vld [vmem:[#allocation4 + $0x2c0] ss:$16 sps:$4 sm:$0xff]  }
 0x2c1   : > { %2844 = vmatprep.subr.bf16.mxu0 %v4278_v29  ;;  %2930 = vmatprep.subr.bf16.mxu1 %v4281_v30  ;;  %v4315_v29 = vld [vmem:[#allocation4 + $0x2c8] ss:$16 sps:$4 sm:$0xff]   ;;  %v4320_v30 = vld [vmem:[#allocation4 + $0x2e4] ss:$16 sps:$4 sm:$0xff]  }
 0x356   : > { %v1947_v36 = vpop.f32.mrb[8].mxu0  ;;  %v1990_v37 = vpop.f32.mrb[8].mxu1 }
 0x357   : > { %v1948_v38 = vadd.f32 %v1947_v36, %v1858_v32  ;;  %v1991_v39 = vadd.f32 %v1990_v37, %v1866_v33  ;;  %v1949_v40 = vpop.f32.mrb[9].mxu0  ;;  %v1992_v43 = vpop.f32.mrb[9].mxu1  ;;  %v4324_v36 = vld [vmem:[#allocation4 + $0x300] ss:$16 sps:$4 sm:$0xff]   ;;  %v4327_v37 = vld [vmem:[#allocation4 + $0x308] ss:$16 sps:$4 sm:$0xff]  }
 0x358   : > { %v1950_v51 = vadd.f32 %v1949_v40, %v1862_v34  ;;  %v1993_v44 = vadd.f32 %v1992_v43, %v1870_v35  ;;  %v1951_v45 = vpop.f32.mrb[10].mxu0  ;;  %v1994_v46 = vpop.f32.mrb[10].mxu1  ;;  %v4330_v40 = vld [vmem:[#allocation4 + $0x320] ss:$16 sps:$4 sm:$0xff]   ;;  %v4333_v43 = vld [vmem:[#allocation4 + $0x328] ss:$16 sps:$4 sm:$0xff]  }
 0x359   : > { %v1952_v48 = vadd.f32 %v1951_v45, %v1858_v32  ;;  %v1995_v49 = vadd.f32 %v1994_v46, %v1866_v33  ;;  %v1953_v50 = vpop.f32.mrb[11].mxu0  ;;  %v1996_v52 = vpop.f32.mrb[11].mxu1  ;;  %v1999_v56 = vmax.f32 %v1948_v38, 0.0  ;;  %v2001_v57 = vmax.f32 %v1991_v39, 0.0  ;;  %v4318_v32 = vld [vmem:[#allocation4 + $0x2e0] ss:$16 sps:$4 sm:$0xff]  }
 0x35a   : > { %v1954_v53 = vadd.f32 %v1953_v50, %v1862_v34  ;;  %v1997_v54 = vadd.f32 %v1996_v52, %v1870_v35  ;;  %v2000_v61 = vmax.f32 %v1950_v51, 0.0  ;;  %v2002_v62 = vmax.f32 %v1993_v44, 0.0  ;;  %v4321_v33 = vld [vmem:[#allocation4 + $0x2e8] ss:$16 sps:$4 sm:$0xff]   ;;  %v4326_v34 = vld [vmem:[#allocation4 + $0x304] ss:$16 sps:$4 sm:$0xff]  }
 0x35b   : > { %v2003_v58 = vmax.f32 %v1952_v48, 0.0  ;;  %v2005_v59 = vmax.f32 %v1995_v49, 0.0  ;;  %v4329_v35 = vld [vmem:[#allocation4 + $0x30c] ss:$16 sps:$4 sm:$0xff]   ;;  %v4332_v38 = vld [vmem:[#allocation4 + $0x324] ss:$16 sps:$4 sm:$0xff]  }
 0x35c   : > { %v2004_v63 = vmax.f32 %v1954_v53, 0.0  ;;  %v2006_v0 = vmax.f32 %v1997_v54, 0.0  ;;  %v4335_v39 = vld [vmem:[#allocation4 + $0x32c] ss:$16 sps:$4 sm:$0xff]   ;;  %v4338_v51 = vld [vmem:[#allocation4 + $0x344] ss:$16 sps:$4 sm:$0xff]  }
 0x35d   : > { %v2007_v1 = vpack.c.bf16 %v2003_v58, %v1999_v56  ;;  %v4836_v2 = vpack.c.bf16 %v2005_v59, %v2001_v57  ;;  %v4341_v44 = vld [vmem:[#allocation4 + $0x34c] ss:$16 sps:$4 sm:$0xff]   ;;  %v4336_v45 = vld [vmem:[#allocation4 + $0x340] ss:$16 sps:$4 sm:$0xff]   ;;  %v4339_v46 = vld [vmem:[#allocation4 + $0x348] ss:$16 sps:$4 sm:$0xff]  }
 0x35e   : > { %v2008_v3 = vpack.c.bf16 %v2004_v63, %v2000_v61  ;;  %v2010_v4 = vpack.c.bf16 %v2006_v0, %v2002_v62  ;;  %v4344_v48 = vld [vmem:[#allocation4 + $0x364] ss:$16 sps:$4 sm:$0xff]   ;;  %v4347_v49 = vld [vmem:[#allocation4 + $0x36c] ss:$16 sps:$4 sm:$0xff]   ;;  %v4342_v50 = vld [vmem:[#allocation4 + $0x360] ss:$16 sps:$4 sm:$0xff]  }
 0x35f   : > { %v4345_v52 = vld [vmem:[#allocation4 + $0x368] ss:$16 sps:$4 sm:$0xff]   ;;  %v4350_v53 = vld [vmem:[#allocation4 + $0x384] ss:$16 sps:$4 sm:$0xff]   ;;  %v4353_v54 = vld [vmem:[#allocation4 + $0x38c] ss:$16 sps:$4 sm:$0xff]  }
 0x360   : > { %2833 = vmatprep.mubr.bf16.mxu0 %v2008_v3  ;;  %2919 = vmatprep.mubr.bf16.mxu1 %v2008_v3  ;;  %v4348_v56 = vld [vmem:[#allocation4 + $0x380] ss:$16 sps:$4 sm:$0xff]   ;;  %v4351_v57 = vld [vmem:[#allocation4 + $0x388] ss:$16 sps:$4 sm:$0xff]   ;;  %v4356_v58 = vld [vmem:[#allocation4 + $0x3a4] ss:$16 sps:$4 sm:$0xff]  }
 0x361   : > { %2834 = vmatmul.mubr.bf16.vlgmr.msra.gmra.mrb[12].mxu0 %v2007_v1  ;;  %2920 = vmatmul.mubr.bf16.vlgmr.msra.gmra.mrb[12].mxu1 %v2007_v1  ;;  %v4359_v59 = vld [vmem:[#allocation4 + $0x3ac] ss:$16 sps:$4 sm:$0xff]   ;;  %v4354_v61 = vld [vmem:[#allocation4 + $0x3a0] ss:$16 sps:$4 sm:$0xff]   ;;  %v4357_v62 = vld [vmem:[#allocation4 + $0x3a8] ss:$16 sps:$4 sm:$0xff]  }
 0x362   : > { %2845 = vmatpush1.bf16.msra.mxu0 %v4276_v5  ;;  %2931 = vmatpush1.bf16.msra.mxu1 %v4279_v6  ;;  %v4362_v63 = vld [vmem:[#allocation4 + $0x3c4] ss:$16 sps:$4 sm:$0xff]   ;;  %v4365_v0 = vld [vmem:[#allocation4 + $0x3cc] ss:$16 sps:$4 sm:$0xff]   ;;  %v4360_v1 = vld [vmem:[#allocation4 + $0x3c0] ss:$16 sps:$4 sm:$0xff]  }
 0x363   : > { %2876 = vmatprep.mubr.bf16.mxu0 %v2010_v4  ;;  %2962 = vmatprep.mubr.bf16.mxu1 %v2010_v4  ;;  %v4363_v3 = vld [vmem:[#allocation4 + $0x3c8] ss:$16 sps:$4 sm:$0xff]   ;;  %v4368_v4 = vld [vmem:[#allocation4 + $0x3e4] ss:$16 sps:$4 sm:$0xff]   ;;  %v4371_v5 = vld [vmem:[#allocation4 + $0x3ec] ss:$16 sps:$4 sm:$0xff]  }
 0x364   : > { %2846 = vmatprep.subr.bf16.mxu0 %v4284_v7  ;;  %2932 = vmatprep.subr.bf16.mxu1 %v4287_v42  ;;  %v4366_v6 = vld [vmem:[#allocation4 + $0x3e0] ss:$16 sps:$4 sm:$0xff]   ;;  %v4369_v7 = vld [vmem:[#allocation4 + $0x3e8] ss:$16 sps:$4 sm:$0xff]  }
 0x365   : > { %v4372_v42 = vld [vmem:[%s4972_s10 + $0x40] sm:$0xff]  }
 0x366   : > { %2847 = vmatpush1.bf16.msra.mxu0 %v4282_v8  ;;  %2933 = vmatpush1.bf16.msra.mxu1 %v4285_v9  ;;  %v4373_v8 = vld [vmem:[%s4972_s10 + $0xc0] sm:$0xff]  }
 0x367   : > { %2848 = vmatprep.subr.bf16.mxu0 %v4290_v10  ;;  %2934 = vmatprep.subr.bf16.mxu1 %v4293_v11  ;;  %v4374_v9 = vld [vmem:[%s4972_s10] sm:$0xff]   ;;  %v4376_v11 = vld [vmem:[%s4972_s10 + $0x48] sm:$0xff]  }
 0x368   : > { %v4375_v10 = vld [vmem:[%s4972_s10 + $0x80] sm:$0xff]  }
 0x36a   : > { %2849 = vmatpush1.bf16.msra.mxu0 %v4288_v12  ;;  %2935 = vmatpush1.bf16.msra.mxu1 %v4291_v13  ;;  %v4377_v12 = vld [vmem:[%s4972_s10 + $0xc8] sm:$0xff]  }
 0x36b   : > { %2850 = vmatprep.subr.bf16.mxu0 %v4296_v14  ;;  %2936 = vmatprep.subr.bf16.mxu1 %v4299_v15  ;;  %v4378_v13 = vld [vmem:[%s4972_s10 + $0x8] sm:$0xff]   ;;  %v4380_v15 = vld [vmem:[%s4972_s10 + $0x50] sm:$0xff]  }
 0x36c   : > { %v4379_v14 = vld [vmem:[%s4972_s10 + $0x88] sm:$0xff]  }
 0x36e   : > { %2851 = vmatpush1.bf16.msra.mxu0 %v4294_v16  ;;  %2937 = vmatpush1.bf16.msra.mxu1 %v4297_v17  ;;  %v4382_v16 = vld [vmem:[%s4972_s10 + $0x10] sm:$0xff]  }
 0x36f   : > { %2852 = vmatprep.subr.bf16.mxu0 %v4302_v18  ;;  %2938 = vmatprep.subr.bf16.mxu1 %v4305_v19  ;;  %v4383_v17 = vld [vmem:[%s4972_s10 + $0x90] sm:$0xff]   ;;  %v4384_v18 = vld [vmem:[%s4972_s10 + $0x58] sm:$0xff]  }
 0x370   : > { %v4385_v19 = vld [vmem:[%s4972_s10 + $0xd8] sm:$0xff]  }
 0x372   : > { %2853 = vmatpush1.bf16.msra.mxu0 %v4300_v20  ;;  %2939 = vmatpush1.bf16.msra.mxu1 %v4303_v21  ;;  %v4386_v20 = vld [vmem:[%s4972_s10 + $0x18] sm:$0xff]  }
 0x373   : > { %2854 = vmatprep.subr.bf16.mxu0 %v4308_v22  ;;  %2940 = vmatprep.subr.bf16.mxu1 %v4311_v23  ;;  %v4387_v21 = vld [vmem:[%s4972_s10 + $0x98] sm:$0xff]   ;;  %v4388_v22 = vld [vmem:[%s4972_s10 + $0x60] sm:$0xff]  }
 0x374   : > { %v4389_v23 = vld [vmem:[%s4972_s10 + $0xe0] sm:$0xff]  }
 0x376   : > { %2855 = vmatpush1.bf16.msra.mxu0 %v4306_v24  ;;  %2941 = vmatpush1.bf16.msra.mxu1 %v4309_v25  ;;  %v4390_v24 = vld [vmem:[%s4972_s10 + $0x20] sm:$0xff]  }
 0x377   : > { %2856 = vmatprep.subr.bf16.mxu0 %v4314_v26  ;;  %2942 = vmatprep.subr.bf16.mxu1 %v4317_v27  ;;  %v4391_v25 = vld [vmem:[%s4972_s10 + $0xa0] sm:$0xff]   ;;  %v4392_v26 = vld [vmem:[%s4972_s10 + $0x68] sm:$0xff]  }
 0x378   : > { %v4393_v27 = vld [vmem:[%s4972_s10 + $0xe8] sm:$0xff]  }
 0x37a   : > { %2857 = vmatpush1.bf16.msra.mxu0 %v4312_v28  ;;  %2943 = vmatpush1.bf16.msra.mxu1 %v4315_v29  ;;  %v4394_v28 = vld [vmem:[%s4972_s10 + $0x28] sm:$0xff]  }
 0x37b   : > { %2858 = vmatprep.subr.bf16.mxu0 %v4320_v30  ;;  %2944 = vmatprep.subr.bf16.mxu1 %v4323_v31  ;;  %v4395_v29 = vld [vmem:[%s4972_s10 + $0xa8] sm:$0xff]   ;;  %v4396_v30 = vld [vmem:[%s4972_s10 + $0x70] sm:$0xff]  }
 0x37c   : > { %v4397_v31 = vld [vmem:[%s4972_s10 + $0xf0] sm:$0xff]  }
 0x37e   : > { %2859 = vmatpush1.bf16.msra.mxu0 %v4318_v32  ;;  %2945 = vmatpush1.bf16.msra.mxu1 %v4321_v33  ;;  %v4398_v32 = vld [vmem:[%s4972_s10 + $0x30] sm:$0xff]  }
 0x37f   : > { %2860 = vmatprep.subr.bf16.mxu0 %v4326_v34  ;;  %2946 = vmatprep.subr.bf16.mxu1 %v4329_v35  ;;  %v4399_v33 = vld [vmem:[%s4972_s10 + $0xb0] sm:$0xff]   ;;  %v4400_v34 = vld [vmem:[%s4972_s10 + $0x78] sm:$0xff]  }
 0x380   : > { %v4401_v35 = vld [vmem:[%s4972_s10 + $0xf8] sm:$0xff]  }
 0x382   : > { %2861 = vmatpush1.bf16.msra.mxu0 %v4324_v36  ;;  %2947 = vmatpush1.bf16.msra.mxu1 %v4327_v37  ;;  %v4402_v36 = vld [vmem:[%s4972_s10 + $0x38] sm:$0xff]  }
 0x383   : > { %2862 = vmatprep.subr.bf16.mxu0 %v4332_v38  ;;  %2948 = vmatprep.subr.bf16.mxu1 %v4335_v39  ;;  %v4403_v37 = vld [vmem:[%s4972_s10 + $0xb8] sm:$0xff]   ;;  %v2139_v38 = vld [vmem:[%s4971_s9] sm:$0xf] }
 0x384   : > { %v2144_v39 = vrot.slane %v2139_v38, %v4684_v60 }
 0x386   : > { %2863 = vmatpush1.bf16.msra.mxu0 %v4330_v40  ;;  %2949 = vmatpush1.bf16.msra.mxu1 %v4333_v43  ;;  %v2152_v40 = vrot.slane %v2139_v38, %v4706_v55  ;;  %v2148_v43 = vrot.slane %v2139_v38, %v4671_v47 }
 0x387   : > { %2864 = vmatprep.subr.bf16.mxu0 %v4338_v51  ;;  %2950 = vmatprep.subr.bf16.mxu1 %v4341_v44  ;;  %v2156_v51 = vrot.slane %v2139_v38, %v4695_v41 }
 0x38a   : > { %2865 = vmatpush1.bf16.msra.mxu0 %v4336_v45  ;;  %2951 = vmatpush1.bf16.msra.mxu1 %v4339_v46 }
 0x38b   : > { %2866 = vmatprep.subr.bf16.mxu0 %v4344_v48  ;;  %2952 = vmatprep.subr.bf16.mxu1 %v4347_v49 }
 0x38e   : > { %2867 = vmatpush1.bf16.msra.mxu0 %v4342_v50  ;;  %2953 = vmatpush1.bf16.msra.mxu1 %v4345_v52 }
 0x38f   : > { %2868 = vmatprep.subr.bf16.mxu0 %v4350_v53  ;;  %2954 = vmatprep.subr.bf16.mxu1 %v4353_v54 }
 0x392   : > { %2869 = vmatpush1.bf16.msra.mxu0 %v4348_v56  ;;  %2955 = vmatpush1.bf16.msra.mxu1 %v4351_v57 }
 0x393   : > { %2870 = vmatprep.subr.bf16.mxu0 %v4356_v58  ;;  %2956 = vmatprep.subr.bf16.mxu1 %v4359_v59 }
 0x396   : > { %2871 = vmatpush1.bf16.msra.mxu0 %v4354_v61  ;;  %2957 = vmatpush1.bf16.msra.mxu1 %v4357_v62 }
 0x397   : > { %2872 = vmatprep.subr.bf16.mxu0 %v4362_v63  ;;  %2958 = vmatprep.subr.bf16.mxu1 %v4365_v0 }
 0x39a   : > { %2873 = vmatpush1.bf16.msra.mxu0 %v4360_v1  ;;  %2959 = vmatpush1.bf16.msra.mxu1 %v4363_v3 }
 0x39b   : > { %2874 = vmatprep.subr.bf16.mxu0 %v4368_v4  ;;  %2960 = vmatprep.subr.bf16.mxu1 %v4371_v5 }
 0x39e   : > { %2875 = vmatpush1.bf16.msra.mxu0 %v4366_v6  ;;  %2961 = vmatpush1.bf16.msra.mxu1 %v4369_v7 }
 0x39f   : > { %3829 = vmatprep.subr.bf16.mxu0 %v4372_v42  ;;  %3851 = vmatprep.subr.bf16.mxu1 %v4373_v8 }
 0x3a1   : > { %2877 = vmatmul.mubr.bf16.vlgmr.msra.gmra.mrb[12].mxu0 %v4836_v2  ;;  %2963 = vmatmul.mubr.bf16.vlgmr.msra.gmra.mrb[12].mxu1 %v4836_v2  ;;  %v4381_v2 = vld [vmem:[%s4972_s10 + $0xd0] sm:$0xff]  }
 0x3a2   : > { %3830 = vmatpush3.bf16.msra.mxu0 %v4374_v9  ;;  %3852 = vmatpush3.bf16.msra.mxu1 %v4375_v10  ;;  %v3748_v10 = vld [vmem:[%s4973_s11] ss:$0 sm:$0xff] }
 0x3a3   : > { %3831 = vmatprep.subr.bf16.mxu0 %v4376_v11  ;;  %3853 = vmatprep.subr.bf16.mxu1 %v4377_v12 }
 0x3a6   : > { %3832 = vmatpush3.bf16.msra.mxu0 %v4378_v13  ;;  %3854 = vmatpush3.bf16.msra.mxu1 %v4379_v14 }
 0x3a7   : > { %3833 = vmatprep.subr.bf16.mxu0 %v4380_v15  ;;  %3855 = vmatprep.subr.bf16.mxu1 %v4381_v2 }
 0x3aa   : > { %3834 = vmatpush3.bf16.msra.mxu0 %v4382_v16  ;;  %3856 = vmatpush3.bf16.msra.mxu1 %v4383_v17 }
 0x3ab   : > { %3835 = vmatprep.subr.bf16.mxu0 %v4384_v18  ;;  %3857 = vmatprep.subr.bf16.mxu1 %v4385_v19 }
 0x3ae   : > { %3836 = vmatpush3.bf16.msra.mxu0 %v4386_v20  ;;  %3858 = vmatpush3.bf16.msra.mxu1 %v4387_v21 }
 0x3af   : > { %3837 = vmatprep.subr.bf16.mxu0 %v4388_v22  ;;  %3859 = vmatprep.subr.bf16.mxu1 %v4389_v23 }
 0x3b2   : > { %3838 = vmatpush3.bf16.msra.mxu0 %v4390_v24  ;;  %3860 = vmatpush3.bf16.msra.mxu1 %v4391_v25 }
 0x3b3   : > { %3839 = vmatprep.subr.bf16.mxu0 %v4392_v26  ;;  %3861 = vmatprep.subr.bf16.mxu1 %v4393_v27 }
 0x3b6   : > { %3840 = vmatpush3.bf16.msra.mxu0 %v4394_v28  ;;  %3862 = vmatpush3.bf16.msra.mxu1 %v4395_v29 }
 0x3b7   : > { %3841 = vmatprep.subr.bf16.mxu0 %v4396_v30  ;;  %3863 = vmatprep.subr.bf16.mxu1 %v4397_v31 }
 0x3ba   : > { %3842 = vmatpush3.bf16.msra.mxu0 %v4398_v32  ;;  %3864 = vmatpush3.bf16.msra.mxu1 %v4399_v33 }
 0x3bb   : > { %3843 = vmatprep.subr.bf16.mxu0 %v4400_v34  ;;  %3865 = vmatprep.subr.bf16.mxu1 %v4401_v35 }
 0x3be   : > { %3844 = vmatpush3.bf16.msra.mxu0 %v4402_v36  ;;  %3866 = vmatpush3.bf16.msra.mxu1 %v4403_v37 }
 0x474   : > { %v2878_v44 = vpop.f32.mrb[12].mxu0  ;;  %v2964_v45 = vpop.f32.mrb[12].mxu1 }
 0x475   : > { %v3881_v46 = vadd.f32 %v2878_v44, %v2144_v39  ;;  %v3885_v48 = vadd.f32 %v2964_v45, %v2152_v40  ;;  %v2880_v49 = vpop.f32.mrb[13].mxu0  ;;  %v2966_v50 = vpop.f32.mrb[13].mxu1 }
 0x476   : > { %v3882_v52 = vadd.f32 %v2880_v49, %v2148_v43  ;;  %v3886_v53 = vadd.f32 %v2966_v50, %v2156_v51  ;;  %v2882_v54 = vpop.f32.mrb[14].mxu0  ;;  %v2968_v56 = vpop.f32.mrb[14].mxu1 }
 0x477   : > { %v3883_v57 = vadd.f32 %v2882_v54, %v2144_v39  ;;  %v3887_v58 = vadd.f32 %v2968_v56, %v2152_v40  ;;  %v2884_v59 = vpop.f32.mrb[15].mxu0  ;;  %v2970_v60 = vpop.f32.mrb[15].mxu1  ;;  %v2973_v62 = vmax.f32 %v3881_v46, 0.0  ;;  %v2975_v47 = vmax.f32 %v3885_v48, 0.0 }
 0x478   : > { %v3884_v61 = vadd.f32 %v2884_v59, %v2148_v43  ;;  %v3888_v55 = vadd.f32 %v2970_v60, %v2156_v51  ;;  %v2974_v0 = vmax.f32 %v3882_v52, 0.0  ;;  %v2976_v1 = vmax.f32 %v3886_v53, 0.0 }
 0x479   : > { %v2977_v41 = vmax.f32 %v3883_v57, 0.0  ;;  %v2979_v63 = vmax.f32 %v3887_v58, 0.0 }
 0x47a   : > { %v2978_v3 = vmax.f32 %v3884_v61, 0.0  ;;  %v2980_v4 = vmax.f32 %v3888_v55, 0.0 }
 0x47b   : > { %v2981_v5 = vpack.c.bf16 %v2977_v41, %v2973_v62  ;;  %v2983_v6 = vpack.c.bf16 %v2979_v63, %v2975_v47 }
 0x47c   : > { %v2982_v7 = vpack.c.bf16 %v2978_v3, %v2974_v0  ;;  %v2984_v42 = vpack.c.bf16 %v2980_v4, %v2976_v1 }
 0x47e   : > { %3280 = vmatprep.mubr.bf16.mxu0 %v2982_v7  ;;  %3321 = vmatprep.mubr.bf16.mxu1 %v2984_v42 }
 0x47f   : > { %3281 = vmatmul.mubr.bf16.vlgmr.msra.gmra.mrb[16].mxu0 %v2981_v5  ;;  %3322 = vmatmul.mubr.bf16.vlgmr.msra.gmra.mrb[16].mxu1 %v2983_v6 }
 0x552   : > { %v3845_v8 = vpop.f32.mrb[16].mxu0  ;;  %v3867_v9 = vpop.f32.mrb[16].mxu1 }
 0x553   : > { %v3846_v11 = vpop.f32.mrb[17].mxu0  ;;  %v3868_v12 = vpop.f32.mrb[17].mxu1 }
 0x554   : > { %v3847_v13 = vadd.f32 %v3846_v11, %v3845_v8  ;;  %v3869_v14 = vadd.f32 %v3868_v12, %v3867_v9  ;;  %v3848_v15 = vpop.f32.mrb[18].mxu0  ;;  %v3870_v2 = vpop.f32.mrb[18].mxu1 }
 0x555   : > { %v3849_v16 = vpop.f32.mrb[19].mxu0  ;;  %v3871_v17 = vpop.f32.mrb[19].mxu1 }
 0x556   : > { %v3283_v18 = vadd.f32 %v3847_v13, %v3748_v10  ;;  %v3850_v19 = vadd.f32 %v3849_v16, %v3848_v15  ;;  %v3872_v20 = vadd.f32 %v3871_v17, %v3870_v2 }
 0x558   : > { %v3324_v21 = vadd.f32 %v3869_v14, %v3283_v18  ;;  %v3286_v22 = vadd.f32 %v3850_v19, %v3748_v10 }
 0x55a   : > { %3330 = vst.msk [vmem:[%s470_s28] sm:$0xff] %vm1893_vm2, %v3324_v21  ;;  %v3327_v23 = vadd.f32 %v3872_v20, %v3286_v22 }
 0x55c   : > { %3331 = vst.msk [vmem:[%s470_s28 + $0x8] sm:$0xff] %vm1893_vm2, %v3327_v23 }
 0x55d PF: > { %s24_s23 = sadd.s32 1, %s4490_s23   ;;  %s4986_s21 = sld [smem:[#allocation8_spill]] }
 0x55e   : > { %p21_p8 = scmp.ge.s32.totalorder %s24_s23, 4   ;;  %s4987_s22 = sld [smem:[#allocation9_spill]] }
 0x560   :  { %23 = sbr.rel (!%p21_p8) target bundleno = 3 (0x3), region = 109 }
 0x567   :  { %3362 = vsyncpa [#allocation3], 1 }
 0x568   :  { %3364 = vsyncpa [#allocation3 + $0x1], 1 }
 0x569   :  { %3365 = vsyncpa [#allocation5], 1 }

</bundles_post_ra>
